<compile_context>
chip_gen: v6e
topology: v6e:2x2x1
jax: 0.10.0
libtpu: 0.0.40
codegen_flags: <defaults>
</compile_context>

<pallas_src>
import jax
import jax.numpy as jnp
from jax import lax
from jax.experimental import pallas as pl
from jax.experimental.pallas import tpu as pltpu

# Model hyperparameters (small, consistent with the module's __init__):
F_OBJ = 8          # f_obj
H = 32             # h (LSTM hidden)
LAYERS = (32, 16)  # MLP hidden layer sizes
SEQ = 8            # per-input sequence length (x1 and x2 each)
BATCH = 2


def make_lstm_mlp_kernel(T, Bp, H):
    """Build the kernel with static T/Bp/H so the recurrence fully unrolls."""

    def kernel(x_ref, wih_ref, whh_ref, b_ref,
               w1_ref, b1_ref, w2_ref, b2_ref, w3_ref, b3_ref,
               out_ref, gx_ref):
        # ---- Hoisted input projection: all timesteps in one lane-dense matmul
        # with the (b_ih + b_hh) bias folded in once. Written to a VMEM scratch
        # so the unrolled recurrence reloads 2 vregs per step rather than
        # holding the whole (T*Bp, 4H) slab in registers.
        gx_ref[...] = jnp.dot(x_ref[...], wih_ref[...],
                              preferred_element_type=jnp.float32) + b_ref[...]

        whh = whh_ref[...]   # (H, 4H), bf16 by default (f32 MXU accumulation)

        # Lane mask for the g-gate block (lanes [2H, 3H)); hoisted once.
        lane = lax.broadcasted_iota(jnp.int32, (Bp, 4 * H), 1)
        g_mask = jnp.logical_and(lane >= 2 * H, lane < 3 * H)

        # h0 = c0 = 0 (PyTorch default), carried in registers.
        h = jnp.zeros((Bp, H), jnp.float32)
        c = jnp.zeros((Bp, H), jnp.float32)

        # Statically unrolled recurrence — only the h @ W_hh matmul, one tanh
        # over the gate tile, tanh(c), and the cell update sit on the serial
        # dependence chain.
        # (Possible next step if the bundle shows per-step RHS re-pushes:
        #  pltpu.matmul_push_rhs(whh) once, matmul_acc_lhs/matmul_pop per step.)
        for t in range(T):
            # Static, sublane-aligned (Bp = 8) slice of the precomputed gx.
            pre = gx_ref[t * Bp:(t + 1) * Bp, :] + jnp.dot(
                h.astype(whh.dtype), whh, preferred_element_type=jnp.float32)  # (Bp, 4H)

            # Single EUP pass: sigmoid(x) = 0.5 * tanh(0.5 * x) + 0.5.
            z = jnp.where(g_mask, pre, 0.5 * pre)
            th = jnp.tanh(z)
            act = jnp.where(g_mask, th, 0.5 * th + 0.5)

            i = act[:, 0 * H:1 * H]
            f = act[:, 1 * H:2 * H]
            g = act[:, 2 * H:3 * H]
            o = act[:, 3 * H:4 * H]

            c = f * c + i * g
            h = o * jnp.tanh(c)

        # MLP head: Linear -> ReLU -> Linear -> ReLU -> Linear(->2)
        y = jnp.maximum(jnp.dot(h, w1_ref[...],
                                preferred_element_type=jnp.float32) + b1_ref[...], 0.0)
        y = jnp.maximum(jnp.dot(y, w2_ref[...],
                                preferred_element_type=jnp.float32) + b2_ref[...], 0.0)
        out_ref[...] = jnp.dot(y, w3_ref[...],
                               preferred_element_type=jnp.float32) + b3_ref[...]

    return kernel


def init_params(key):
    """Deterministic parameter init (PyTorch-style uniform ranges)."""
    ks = jax.random.split(key, 12)
    s_lstm = 1.0 / jnp.sqrt(H)

    def u(k, shape, scale):
        return jax.random.uniform(k, shape, jnp.float32, -scale, scale)

    params = dict(
        w_ih=u(ks[0], (4 * H, F_OBJ), s_lstm),
        w_hh=u(ks[1], (4 * H, H), s_lstm),
        b_ih=u(ks[2], (4 * H,), s_lstm),
        b_hh=u(ks[3], (4 * H,), s_lstm),
    )
    dims = (H,) + LAYERS + (2,)
    for li in range(3):
        f_in, f_out = dims[li], dims[li + 1]
        s = 1.0 / jnp.sqrt(f_in)
        params[f"w{li + 1}"] = u(ks[4 + 2 * li], (f_out, f_in), s)
        params[f"b{li + 1}"] = u(ks[5 + 2 * li], (f_out,), s)
    return params


def double_naive_lstm_forward(x1, x2, params, *, recurrent_bf16=True):
    """Mirrors: out = lstm(cat([x1, x2], 0))[0][-1]; return mlp(out).

    recurrent_bf16=True (default) casts W_hh (and h at the dot) to bf16 for a
    single-pass MXU recurrence on v5e/v6e/v7x; f32 accumulation and all
    elementwise math stay in f32. Set False for a bit-tight f32 reference match.
    """
    # Glue (concat, batch padding, flatten, weight transposes) stays in plain JAX.
    x = jnp.concatenate([x1, x2], axis=0)                 # (2*SEQ, B, F)
    T, B, F = x.shape
    Bp = ((B + 7) // 8) * 8                               # pad batch to f32 sublane count
    x = jnp.pad(x, ((0, 0), (0, Bp - B), (0, 0)))
    x2d = x.reshape(T * Bp, F)                            # lane-dense input-proj operand

    wih_t = params["w_ih"].T                              # (F, 4H)
    whh_t = params["w_hh"].T                              # (H, 4H)
    if recurrent_bf16:
        whh_t = whh_t.astype(jnp.bfloat16)
    b = (params["b_ih"] + params["b_hh"]).reshape(1, 4 * H)
    w1t = params["w1"].T                                  # (H, L0)
    b1 = params["b1"].reshape(1, -1)
    w2t = params["w2"].T                                  # (L0, L1)
    b2 = params["b2"].reshape(1, -1)
    w3t = params["w3"].T                                  # (L1, 2)
    b3 = params["b3"].reshape(1, -1)

    kernel = make_lstm_mlp_kernel(T, Bp, H)
    # Single invocation (no grid): the whole problem is a few KiB and fits one
    # VMEM tile. When batch is scaled, add a parallel grid over batch blocks
    # (v7x: 2 TCs; v7x VMEM is 64 MiB so tile gx at B >~ 4K).
    out = pl.pallas_call(
        kernel,
        out_shape=jax.ShapeDtypeStruct((Bp, 2), jnp.float32),
        scratch_shapes=[pltpu.VMEM((T * Bp, 4 * H), jnp.float32)],
    )(x2d, wih_t, whh_t, b, w1t, b1, w2t, b2, w3t, b3)
    # Padded rows never mix with real rows; drop them here.
    return out[:B]


def reference_forward(x1, x2, params, *, recurrent_bf16=False):
    """Pure-JAX reference for correctness checking."""
    x = jnp.concatenate([x1, x2], axis=0)
    T, B, _ = x.shape
    h = jnp.zeros((B, H), jnp.float32)
    c = jnp.zeros((B, H), jnp.float32)
    wih_t = params["w_ih"].T
    whh_t = params["w_hh"].T
    if recurrent_bf16:
        whh_t = whh_t.astype(jnp.bfloat16)
    bias = params["b_ih"] + params["b_hh"]
    for t in range(T):
        rec = jnp.dot(h.astype(whh_t.dtype), whh_t,
                      preferred_element_type=jnp.float32)
        gates = x[t] @ wih_t + rec + bias
        i = jax.nn.sigmoid(gates[:, 0 * H:1 * H])
        f = jax.nn.sigmoid(gates[:, 1 * H:2 * H])
        g = jnp.tanh(gates[:, 2 * H:3 * H])
        o = jax.nn.sigmoid(gates[:, 3 * H:4 * H])
        c = f * c + i * g
        h = o * jnp.tanh(c)
    y = jnp.maximum(h @ params["w1"].T + params["b1"], 0.0)
    y = jnp.maximum(y @ params["w2"].T + params["b2"], 0.0)
    return y @ params["w3"].T + params["b3"]


if __name__ == "__main__":
    key = jax.random.PRNGKey(0)
    k_p, k_x1, k_x2 = jax.random.split(key, 3)
    params = init_params(k_p)

    x1 = jax.random.normal(k_x1, (SEQ, BATCH, F_OBJ), jnp.float32)
    x2 = jax.random.normal(k_x2, (SEQ, BATCH, F_OBJ), jnp.float32)

    # Default (bf16 recurrent weights) path.
    out = double_naive_lstm_forward(x1, x2, params)
    out = jax.block_until_ready(out)
    assert out.shape == (BATCH, 2)

    # Tight check vs. a reference using the same bf16 recurrent matmul.
    ref_bf16 = reference_forward(x1, x2, params, recurrent_bf16=True)
    assert jnp.allclose(out, ref_bf16, atol=1e-3, rtol=1e-3), (out, ref_bf16)

    # Loose sanity check vs. the pure-f32 reference (bf16 W_hh rounding only).
    ref_f32 = reference_forward(x1, x2, params, recurrent_bf16=False)
    assert jnp.allclose(out, ref_f32, atol=5e-2, rtol=5e-2), (out, ref_f32)

    # The f32 path still matches the f32 reference tightly.
    out_f32 = double_naive_lstm_forward(x1, x2, params, recurrent_bf16=False)
    out_f32 = jax.block_until_ready(out_f32)
    assert jnp.allclose(out_f32, ref_f32, atol=1e-4, rtol=1e-4), (out_f32, ref_f32)

    print("KERNEL_OK")
</pallas_src>

<mosaic_0001>
module attributes {stable_mosaic.version = 11 : i64} {
  func.func @kernel(%arg0: memref<128x8xf32, #tpu.memory_space<vmem>>, %arg1: memref<8x128xf32, #tpu.memory_space<vmem>>, %arg2: memref<32x128xbf16, #tpu.memory_space<vmem>>, %arg3: memref<1x128xf32, #tpu.memory_space<vmem>>, %arg4: memref<32x32xf32, #tpu.memory_space<vmem>>, %arg5: memref<1x32xf32, #tpu.memory_space<vmem>>, %arg6: memref<32x16xf32, #tpu.memory_space<vmem>>, %arg7: memref<1x16xf32, #tpu.memory_space<vmem>>, %arg8: memref<16x2xf32, #tpu.memory_space<vmem>>, %arg9: memref<1x2xf32, #tpu.memory_space<vmem>>, %arg10: memref<8x2xf32, #tpu.memory_space<vmem>>, %arg11: memref<128x128xf32, #tpu.memory_space<vmem>>) attributes {dimension_semantics = [], scalar_prefetch = 0 : i64, scratch_operands = 1 : i64, tpu.core_type = #tpu.core_type<tc>} {
    %c0 = arith.constant 0 : index
    %c0_0 = arith.constant 0 : index
    %0 = vector.load %arg0[%c0, %c0_0] : memref<128x8xf32, #tpu.memory_space<vmem>>, vector<128x8xf32>
    %c0_1 = arith.constant 0 : index
    %c0_2 = arith.constant 0 : index
    %1 = vector.load %arg1[%c0_1, %c0_2] : memref<8x128xf32, #tpu.memory_space<vmem>>, vector<8x128xf32>
    %cst = arith.constant dense<0.000000e+00> : vector<128x128xf32>
    %2 = tpu.matmul %0, %1, %cst {dimension_numbers = #tpu.dot_dimension_numbers<[1], [0], [0], [1], [0, 0, 1, 1], [], []>} : vector<128x8xf32>, vector<8x128xf32>, vector<128x128xf32> -> vector<128x128xf32>
    %c0_3 = arith.constant 0 : index
    %c0_4 = arith.constant 0 : index
    %3 = vector.load %arg3[%c0_3, %c0_4] : memref<1x128xf32, #tpu.memory_space<vmem>>, vector<1x128xf32>
    %4 = vector.broadcast %3 : vector<1x128xf32> to vector<128x128xf32>
    %5 = arith.addf %2, %4 : vector<128x128xf32>
    %c0_5 = arith.constant 0 : index
    %c0_6 = arith.constant 0 : index
    %6 = vector.load %arg11[%c0_5, %c0_6] : memref<128x128xf32, #tpu.memory_space<vmem>>, vector<128x128xf32>
    tpu.vector_store %arg11[%c0_5, %c0_6], %5 {strides = array<i32>} : memref<128x128xf32, #tpu.memory_space<vmem>>, vector<128x128xf32>,
    %c0_7 = arith.constant 0 : index
    %c0_8 = arith.constant 0 : index
    %7 = vector.load %arg2[%c0_7, %c0_8] : memref<32x128xbf16, #tpu.memory_space<vmem>>, vector<32x128xbf16>
    %8 = tpu.iota {dimensions = array<i32: 1>} : vector<8x128xi32>
    %c64_i32 = arith.constant 64 : i32
    %9 = vector.broadcast %c64_i32 : i32 to vector<8x128xi32>
    %10 = arith.cmpi sge, %8, %9 : vector<8x128xi32>
    %c96_i32 = arith.constant 96 : i32
    %11 = vector.broadcast %c96_i32 : i32 to vector<8x128xi32>
    %12 = arith.cmpi slt, %8, %11 : vector<8x128xi32>
    %13 = arith.andi %10, %12 : vector<8x128xi1>
    %cst_9 = arith.constant 0.000000e+00 : f32
    %14 = vector.broadcast %cst_9 : f32 to vector<8x32xf32>
    %cst_10 = arith.constant 0.000000e+00 : f32
    %15 = vector.broadcast %cst_10 : f32 to vector<8x32xf32>
    %c0_11 = arith.constant 0 : index
    %c0_12 = arith.constant 0 : index
    %16 = vector.load %arg11[%c0_11, %c0_12] : memref<128x128xf32, #tpu.memory_space<vmem>>, vector<8x128xf32>
    %17 = arith.truncf %14 : vector<8x32xf32> to vector<8x32xbf16>
    %cst_13 = arith.constant dense<0.000000e+00> : vector<8x128xf32>
    %18 = tpu.matmul %17, %7, %cst_13 {dimension_numbers = #tpu.dot_dimension_numbers<[1], [0], [0], [1], [0, 0, 1, 1], [], []>} : vector<8x32xbf16>, vector<32x128xbf16>, vector<8x128xf32> -> vector<8x128xf32>
    %19 = arith.addf %16, %18 : vector<8x128xf32>
    %cst_14 = arith.constant 5.000000e-01 : f32
    %20 = vector.broadcast %cst_14 : f32 to vector<8x128xf32>
    %21 = arith.mulf %20, %19 : vector<8x128xf32>
    %22 = arith.select %13, %19, %21 : vector<8x128xi1>, vector<8x128xf32>
    %23 = math.tanh %22 : vector<8x128xf32>
    %cst_15 = arith.constant 5.000000e-01 : f32
    %24 = vector.broadcast %cst_15 : f32 to vector<8x128xf32>
    %25 = arith.mulf %24, %23 : vector<8x128xf32>
    %cst_16 = arith.constant 5.000000e-01 : f32
    %26 = vector.broadcast %cst_16 : f32 to vector<8x128xf32>
    %27 = arith.addf %25, %26 : vector<8x128xf32>
    %28 = arith.select %13, %23, %27 : vector<8x128xi1>, vector<8x128xf32>
    %29 = vector.extract_strided_slice %28 {offsets = [0, 0], sizes = [8, 32], strides = [1, 1]} : vector<8x128xf32> to vector<8x32xf32>
    %30 = vector.extract_strided_slice %28 {offsets = [0, 32], sizes = [8, 32], strides = [1, 1]} : vector<8x128xf32> to vector<8x32xf32>
    %31 = vector.extract_strided_slice %28 {offsets = [0, 64], sizes = [8, 32], strides = [1, 1]} : vector<8x128xf32> to vector<8x32xf32>
    %32 = vector.extract_strided_slice %28 {offsets = [0, 96], sizes = [8, 32], strides = [1, 1]} : vector<8x128xf32> to vector<8x32xf32>
    %33 = arith.mulf %30, %15 : vector<8x32xf32>
    %34 = arith.mulf %29, %31 : vector<8x32xf32>
    %35 = arith.addf %33, %34 : vector<8x32xf32>
    %36 = math.tanh %35 : vector<8x32xf32>
    %37 = arith.mulf %32, %36 : vector<8x32xf32>
    %c8 = arith.constant 8 : index
    %c0_17 = arith.constant 0 : index
    %38 = vector.load %arg11[%c8, %c0_17] : memref<128x128xf32, #tpu.memory_space<vmem>>, vector<8x128xf32>
    %39 = arith.truncf %37 : vector<8x32xf32> to vector<8x32xbf16>
    %cst_18 = arith.constant dense<0.000000e+00> : vector<8x128xf32>
    %40 = tpu.matmul %39, %7, %cst_18 {dimension_numbers = #tpu.dot_dimension_numbers<[1], [0], [0], [1], [0, 0, 1, 1], [], []>} : vector<8x32xbf16>, vector<32x128xbf16>, vector<8x128xf32> -> vector<8x128xf32>
    %41 = arith.addf %38, %40 : vector<8x128xf32>
    %cst_19 = arith.constant 5.000000e-01 : f32
    %42 = vector.broadcast %cst_19 : f32 to vector<8x128xf32>
    %43 = arith.mulf %42, %41 : vector<8x128xf32>
    %44 = arith.select %13, %41, %43 : vector<8x128xi1>, vector<8x128xf32>
    %45 = math.tanh %44 : vector<8x128xf32>
    %cst_20 = arith.constant 5.000000e-01 : f32
    %46 = vector.broadcast %cst_20 : f32 to vector<8x128xf32>
    %47 = arith.mulf %46, %45 : vector<8x128xf32>
    %cst_21 = arith.constant 5.000000e-01 : f32
    %48 = vector.broadcast %cst_21 : f32 to vector<8x128xf32>
    %49 = arith.addf %47, %48 : vector<8x128xf32>
    %50 = arith.select %13, %45, %49 : vector<8x128xi1>, vector<8x128xf32>
    %51 = vector.extract_strided_slice %50 {offsets = [0, 0], sizes = [8, 32], strides = [1, 1]} : vector<8x128xf32> to vector<8x32xf32>
    %52 = vector.extract_strided_slice %50 {offsets = [0, 32], sizes = [8, 32], strides = [1, 1]} : vector<8x128xf32> to vector<8x32xf32>
    %53 = vector.extract_strided_slice %50 {offsets = [0, 64], sizes = [8, 32], strides = [1, 1]} : vector<8x128xf32> to vector<8x32xf32>
    %54 = vector.extract_strided_slice %50 {offsets = [0, 96], sizes = [8, 32], strides = [1, 1]} : vector<8x128xf32> to vector<8x32xf32>
    %55 = arith.mulf %52, %35 : vector<8x32xf32>
    %56 = arith.mulf %51, %53 : vector<8x32xf32>
    %57 = arith.addf %55, %56 : vector<8x32xf32>
    %58 = math.tanh %57 : vector<8x32xf32>
    %59 = arith.mulf %54, %58 : vector<8x32xf32>
    %c16 = arith.constant 16 : index
    %c0_22 = arith.constant 0 : index
    %60 = vector.load %arg11[%c16, %c0_22] : memref<128x128xf32, #tpu.memory_space<vmem>>, vector<8x128xf32>
    %61 = arith.truncf %59 : vector<8x32xf32> to vector<8x32xbf16>
    %cst_23 = arith.constant dense<0.000000e+00> : vector<8x128xf32>
    %62 = tpu.matmul %61, %7, %cst_23 {dimension_numbers = #tpu.dot_dimension_numbers<[1], [0], [0], [1], [0, 0, 1, 1], [], []>} : vector<8x32xbf16>, vector<32x128xbf16>, vector<8x128xf32> -> vector<8x128xf32>
    %63 = arith.addf %60, %62 : vector<8x128xf32>
    %cst_24 = arith.constant 5.000000e-01 : f32
    %64 = vector.broadcast %cst_24 : f32 to vector<8x128xf32>
    %65 = arith.mulf %64, %63 : vector<8x128xf32>
    %66 = arith.select %13, %63, %65 : vector<8x128xi1>, vector<8x128xf32>
    %67 = math.tanh %66 : vector<8x128xf32>
    %cst_25 = arith.constant 5.000000e-01 : f32
    %68 = vector.broadcast %cst_25 : f32 to vector<8x128xf32>
    %69 = arith.mulf %68, %67 : vector<8x128xf32>
    %cst_26 = arith.constant 5.000000e-01 : f32
    %70 = vector.broadcast %cst_26 : f32 to vector<8x128xf32>
    %71 = arith.addf %69, %70 : vector<8x128xf32>
    %72 = arith.select %13, %67, %71 : vector<8x128xi1>, vector<8x128xf32>
    %73 = vector.extract_strided_slice %72 {offsets = [0, 0], sizes = [8, 32], strides = [1, 1]} : vector<8x128xf32> to vector<8x32xf32>
    %74 = vector.extract_strided_slice %72 {offsets = [0, 32], sizes = [8, 32], strides = [1, 1]} : vector<8x128xf32> to vector<8x32xf32>
    %75 = vector.extract_strided_slice %72 {offsets = [0, 64], sizes = [8, 32], strides = [1, 1]} : vector<8x128xf32> to vector<8x32xf32>
    %76 = vector.extract_strided_slice %72 {offsets = [0, 96], sizes = [8, 32], strides = [1, 1]} : vector<8x128xf32> to vector<8x32xf32>
    %77 = arith.mulf %74, %57 : vector<8x32xf32>
    %78 = arith.mulf %73, %75 : vector<8x32xf32>
    %79 = arith.addf %77, %78 : vector<8x32xf32>
    %80 = math.tanh %79 : vector<8x32xf32>
    %81 = arith.mulf %76, %80 : vector<8x32xf32>
    %c24 = arith.constant 24 : index
    %c0_27 = arith.constant 0 : index
    %82 = vector.load %arg11[%c24, %c0_27] : memref<128x128xf32, #tpu.memory_space<vmem>>, vector<8x128xf32>
    %83 = arith.truncf %81 : vector<8x32xf32> to vector<8x32xbf16>
    %cst_28 = arith.constant dense<0.000000e+00> : vector<8x128xf32>
    %84 = tpu.matmul %83, %7, %cst_28 {dimension_numbers = #tpu.dot_dimension_numbers<[1], [0], [0], [1], [0, 0, 1, 1], [], []>} : vector<8x32xbf16>, vector<32x128xbf16>, vector<8x128xf32> -> vector<8x128xf32>
    %85 = arith.addf %82, %84 : vector<8x128xf32>
    %cst_29 = arith.constant 5.000000e-01 : f32
    %86 = vector.broadcast %cst_29 : f32 to vector<8x128xf32>
    %87 = arith.mulf %86, %85 : vector<8x128xf32>
    %88 = arith.select %13, %85, %87 : vector<8x128xi1>, vector<8x128xf32>
    %89 = math.tanh %88 : vector<8x128xf32>
    %cst_30 = arith.constant 5.000000e-01 : f32
    %90 = vector.broadcast %cst_30 : f32 to vector<8x128xf32>
    %91 = arith.mulf %90, %89 : vector<8x128xf32>
    %cst_31 = arith.constant 5.000000e-01 : f32
    %92 = vector.broadcast %cst_31 : f32 to vector<8x128xf32>
    %93 = arith.addf %91, %92 : vector<8x128xf32>
    %94 = arith.select %13, %89, %93 : vector<8x128xi1>, vector<8x128xf32>
    %95 = vector.extract_strided_slice %94 {offsets = [0, 0], sizes = [8, 32], strides = [1, 1]} : vector<8x128xf32> to vector<8x32xf32>
    %96 = vector.extract_strided_slice %94 {offsets = [0, 32], sizes = [8, 32], strides = [1, 1]} : vector<8x128xf32> to vector<8x32xf32>
    %97 = vector.extract_strided_slice %94 {offsets = [0, 64], sizes = [8, 32], strides = [1, 1]} : vector<8x128xf32> to vector<8x32xf32>
    %98 = vector.extract_strided_slice %94 {offsets = [0, 96], sizes = [8, 32], strides = [1, 1]} : vector<8x128xf32> to vector<8x32xf32>
    %99 = arith.mulf %96, %79 : vector<8x32xf32>
    %100 = arith.mulf %95, %97 : vector<8x32xf32>
    %101 = arith.addf %99, %100 : vector<8x32xf32>
    %102 = math.tanh %101 : vector<8x32xf32>
    %103 = arith.mulf %98, %102 : vector<8x32xf32>
    %c32 = arith.constant 32 : index
    %c0_32 = arith.constant 0 : index
    %104 = vector.load %arg11[%c32, %c0_32] : memref<128x128xf32, #tpu.memory_space<vmem>>, vector<8x128xf32>
    %105 = arith.truncf %103 : vector<8x32xf32> to vector<8x32xbf16>
    %cst_33 = arith.constant dense<0.000000e+00> : vector<8x128xf32>
    %106 = tpu.matmul %105, %7, %cst_33 {dimension_numbers = #tpu.dot_dimension_numbers<[1], [0], [0], [1], [0, 0, 1, 1], [], []>} : vector<8x32xbf16>, vector<32x128xbf16>, vector<8x128xf32> -> vector<8x128xf32>
    %107 = arith.addf %104, %106 : vector<8x128xf32>
    %cst_34 = arith.constant 5.000000e-01 : f32
    %108 = vector.broadcast %cst_34 : f32 to vector<8x128xf32>
    %109 = arith.mulf %108, %107 : vector<8x128xf32>
    %110 = arith.select %13, %107, %109 : vector<8x128xi1>, vector<8x128xf32>
    %111 = math.tanh %110 : vector<8x128xf32>
    %cst_35 = arith.constant 5.000000e-01 : f32
    %112 = vector.broadcast %cst_35 : f32 to vector<8x128xf32>
    %113 = arith.mulf %112, %111 : vector<8x128xf32>
    %cst_36 = arith.constant 5.000000e-01 : f32
    %114 = vector.broadcast %cst_36 : f32 to vector<8x128xf32>
    %115 = arith.addf %113, %114 : vector<8x128xf32>
    %116 = arith.select %13, %111, %115 : vector<8x128xi1>, vector<8x128xf32>
    %117 = vector.extract_strided_slice %116 {offsets = [0, 0], sizes = [8, 32], strides = [1, 1]} : vector<8x128xf32> to vector<8x32xf32>
    %118 = vector.extract_strided_slice %116 {offsets = [0, 32], sizes = [8, 32], strides = [1, 1]} : vector<8x128xf32> to vector<8x32xf32>
    %119 = vector.extract_strided_slice %116 {offsets = [0, 64], sizes = [8, 32], strides = [1, 1]} : vector<8x128xf32> to vector<8x32xf32>
    %120 = vector.extract_strided_slice %116 {offsets = [0, 96], sizes = [8, 32], strides = [1, 1]} : vector<8x128xf32> to vector<8x32xf32>
    %121 = arith.mulf %118, %101 : vector<8x32xf32>
    %122 = arith.mulf %117, %119 : vector<8x32xf32>
    %123 = arith.addf %121, %122 : vector<8x32xf32>
    %124 = math.tanh %123 : vector<8x32xf32>
    %125 = arith.mulf %120, %124 : vector<8x32xf32>
    %c40 = arith.constant 40 : index
    %c0_37 = arith.constant 0 : index
    %126 = vector.load %arg11[%c40, %c0_37] : memref<128x128xf32, #tpu.memory_space<vmem>>, vector<8x128xf32>
    %127 = arith.truncf %125 : vector<8x32xf32> to vector<8x32xbf16>
    %cst_38 = arith.constant dense<0.000000e+00> : vector<8x128xf32>
    %128 = tpu.matmul %127, %7, %cst_38 {dimension_numbers = #tpu.dot_dimension_numbers<[1], [0], [0], [1], [0, 0, 1, 1], [], []>} : vector<8x32xbf16>, vector<32x128xbf16>, vector<8x128xf32> -> vector<8x128xf32>
    %129 = arith.addf %126, %128 : vector<8x128xf32>
    %cst_39 = arith.constant 5.000000e-01 : f32
    %130 = vector.broadcast %cst_39 : f32 to vector<8x128xf32>
    %131 = arith.mulf %130, %129 : vector<8x128xf32>
    %132 = arith.select %13, %129, %131 : vector<8x128xi1>, vector<8x128xf32>
    %133 = math.tanh %132 : vector<8x128xf32>
    %cst_40 = arith.constant 5.000000e-01 : f32
    %134 = vector.broadcast %cst_40 : f32 to vector<8x128xf32>
    %135 = arith.mulf %134, %133 : vector<8x128xf32>
    %cst_41 = arith.constant 5.000000e-01 : f32
    %136 = vector.broadcast %cst_41 : f32 to vector<8x128xf32>
    %137 = arith.addf %135, %136 : vector<8x128xf32>
    %138 = arith.select %13, %133, %137 : vector<8x128xi1>, vector<8x128xf32>
    %139 = vector.extract_strided_slice %138 {offsets = [0, 0], sizes = [8, 32], strides = [1, 1]} : vector<8x128xf32> to vector<8x32xf32>
    %140 = vector.extract_strided_slice %138 {offsets = [0, 32], sizes = [8, 32], strides = [1, 1]} : vector<8x128xf32> to vector<8x32xf32>
    %141 = vector.extract_strided_slice %138 {offsets = [0, 64], sizes = [8, 32], strides = [1, 1]} : vector<8x128xf32> to vector<8x32xf32>
    %142 = vector.extract_strided_slice %138 {offsets = [0, 96], sizes = [8, 32], strides = [1, 1]} : vector<8x128xf32> to vector<8x32xf32>
    %143 = arith.mulf %140, %123 : vector<8x32xf32>
    %144 = arith.mulf %139, %141 : vector<8x32xf32>
    %145 = arith.addf %143, %144 : vector<8x32xf32>
    %146 = math.tanh %145 : vector<8x32xf32>
    %147 = arith.mulf %142, %146 : vector<8x32xf32>
    %c48 = arith.constant 48 : index
    %c0_42 = arith.constant 0 : index
    %148 = vector.load %arg11[%c48, %c0_42] : memref<128x128xf32, #tpu.memory_space<vmem>>, vector<8x128xf32>
    %149 = arith.truncf %147 : vector<8x32xf32> to vector<8x32xbf16>
    %cst_43 = arith.constant dense<0.000000e+00> : vector<8x128xf32>
    %150 = tpu.matmul %149, %7, %cst_43 {dimension_numbers = #tpu.dot_dimension_numbers<[1], [0], [0], [1], [0, 0, 1, 1], [], []>} : vector<8x32xbf16>, vector<32x128xbf16>, vector<8x128xf32> -> vector<8x128xf32>
    %151 = arith.addf %148, %150 : vector<8x128xf32>
    %cst_44 = arith.constant 5.000000e-01 : f32
    %152 = vector.broadcast %cst_44 : f32 to vector<8x128xf32>
    %153 = arith.mulf %152, %151 : vector<8x128xf32>
    %154 = arith.select %13, %151, %153 : vector<8x128xi1>, vector<8x128xf32>
    %155 = math.tanh %154 : vector<8x128xf32>
    %cst_45 = arith.constant 5.000000e-01 : f32
    %156 = vector.broadcast %cst_45 : f32 to vector<8x128xf32>
    %157 = arith.mulf %156, %155 : vector<8x128xf32>
    %cst_46 = arith.constant 5.000000e-01 : f32
    %158 = vector.broadcast %cst_46 : f32 to vector<8x128xf32>
    %159 = arith.addf %157, %158 : vector<8x128xf32>
    %160 = arith.select %13, %155, %159 : vector<8x128xi1>, vector<8x128xf32>
    %161 = vector.extract_strided_slice %160 {offsets = [0, 0], sizes = [8, 32], strides = [1, 1]} : vector<8x128xf32> to vector<8x32xf32>
    %162 = vector.extract_strided_slice %160 {offsets = [0, 32], sizes = [8, 32], strides = [1, 1]} : vector<8x128xf32> to vector<8x32xf32>
    %163 = vector.extract_strided_slice %160 {offsets = [0, 64], sizes = [8, 32], strides = [1, 1]} : vector<8x128xf32> to vector<8x32xf32>
    %164 = vector.extract_strided_slice %160 {offsets = [0, 96], sizes = [8, 32], strides = [1, 1]} : vector<8x128xf32> to vector<8x32xf32>
    %165 = arith.mulf %162, %145 : vector<8x32xf32>
    %166 = arith.mulf %161, %163 : vector<8x32xf32>
    %167 = arith.addf %165, %166 : vector<8x32xf32>
    %168 = math.tanh %167 : vector<8x32xf32>
    %169 = arith.mulf %164, %168 : vector<8x32xf32>
    %c56 = arith.constant 56 : index
    %c0_47 = arith.constant 0 : index
    %170 = vector.load %arg11[%c56, %c0_47] : memref<128x128xf32, #tpu.memory_space<vmem>>, vector<8x128xf32>
    %171 = arith.truncf %169 : vector<8x32xf32> to vector<8x32xbf16>
    %cst_48 = arith.constant dense<0.000000e+00> : vector<8x128xf32>
    %172 = tpu.matmul %171, %7, %cst_48 {dimension_numbers = #tpu.dot_dimension_numbers<[1], [0], [0], [1], [0, 0, 1, 1], [], []>} : vector<8x32xbf16>, vector<32x128xbf16>, vector<8x128xf32> -> vector<8x128xf32>
    %173 = arith.addf %170, %172 : vector<8x128xf32>
    %cst_49 = arith.constant 5.000000e-01 : f32
    %174 = vector.broadcast %cst_49 : f32 to vector<8x128xf32>
    %175 = arith.mulf %174, %173 : vector<8x128xf32>
    %176 = arith.select %13, %173, %175 : vector<8x128xi1>, vector<8x128xf32>
    %177 = math.tanh %176 : vector<8x128xf32>
    %cst_50 = arith.constant 5.000000e-01 : f32
    %178 = vector.broadcast %cst_50 : f32 to vector<8x128xf32>
    %179 = arith.mulf %178, %177 : vector<8x128xf32>
    %cst_51 = arith.constant 5.000000e-01 : f32
    %180 = vector.broadcast %cst_51 : f32 to vector<8x128xf32>
    %181 = arith.addf %179, %180 : vector<8x128xf32>
    %182 = arith.select %13, %177, %181 : vector<8x128xi1>, vector<8x128xf32>
    %183 = vector.extract_strided_slice %182 {offsets = [0, 0], sizes = [8, 32], strides = [1, 1]} : vector<8x128xf32> to vector<8x32xf32>
    %184 = vector.extract_strided_slice %182 {offsets = [0, 32], sizes = [8, 32], strides = [1, 1]} : vector<8x128xf32> to vector<8x32xf32>
    %185 = vector.extract_strided_slice %182 {offsets = [0, 64], sizes = [8, 32], strides = [1, 1]} : vector<8x128xf32> to vector<8x32xf32>
    %186 = vector.extract_strided_slice %182 {offsets = [0, 96], sizes = [8, 32], strides = [1, 1]} : vector<8x128xf32> to vector<8x32xf32>
    %187 = arith.mulf %184, %167 : vector<8x32xf32>
    %188 = arith.mulf %183, %185 : vector<8x32xf32>
    %189 = arith.addf %187, %188 : vector<8x32xf32>
    %190 = math.tanh %189 : vector<8x32xf32>
    %191 = arith.mulf %186, %190 : vector<8x32xf32>
    %c64 = arith.constant 64 : index
    %c0_52 = arith.constant 0 : index
    %192 = vector.load %arg11[%c64, %c0_52] : memref<128x128xf32, #tpu.memory_space<vmem>>, vector<8x128xf32>
    %193 = arith.truncf %191 : vector<8x32xf32> to vector<8x32xbf16>
    %cst_53 = arith.constant dense<0.000000e+00> : vector<8x128xf32>
    %194 = tpu.matmul %193, %7, %cst_53 {dimension_numbers = #tpu.dot_dimension_numbers<[1], [0], [0], [1], [0, 0, 1, 1], [], []>} : vector<8x32xbf16>, vector<32x128xbf16>, vector<8x128xf32> -> vector<8x128xf32>
    %195 = arith.addf %192, %194 : vector<8x128xf32>
    %cst_54 = arith.constant 5.000000e-01 : f32
    %196 = vector.broadcast %cst_54 : f32 to vector<8x128xf32>
    %197 = arith.mulf %196, %195 : vector<8x128xf32>
    %198 = arith.select %13, %195, %197 : vector<8x128xi1>, vector<8x128xf32>
    %199 = math.tanh %198 : vector<8x128xf32>
    %cst_55 = arith.constant 5.000000e-01 : f32
    %200 = vector.broadcast %cst_55 : f32 to vector<8x128xf32>
    %201 = arith.mulf %200, %199 : vector<8x128xf32>
    %cst_56 = arith.constant 5.000000e-01 : f32
    %202 = vector.broadcast %cst_56 : f32 to vector<8x128xf32>
    %203 = arith.addf %201, %202 : vector<8x128xf32>
    %204 = arith.select %13, %199, %203 : vector<8x128xi1>, vector<8x128xf32>
    %205 = vector.extract_strided_slice %204 {offsets = [0, 0], sizes = [8, 32], strides = [1, 1]} : vector<8x128xf32> to vector<8x32xf32>
    %206 = vector.extract_strided_slice %204 {offsets = [0, 32], sizes = [8, 32], strides = [1, 1]} : vector<8x128xf32> to vector<8x32xf32>
    %207 = vector.extract_strided_slice %204 {offsets = [0, 64], sizes = [8, 32], strides = [1, 1]} : vector<8x128xf32> to vector<8x32xf32>
    %208 = vector.extract_strided_slice %204 {offsets = [0, 96], sizes = [8, 32], strides = [1, 1]} : vector<8x128xf32> to vector<8x32xf32>
    %209 = arith.mulf %206, %189 : vector<8x32xf32>
    %210 = arith.mulf %205, %207 : vector<8x32xf32>
    %211 = arith.addf %209, %210 : vector<8x32xf32>
    %212 = math.tanh %211 : vector<8x32xf32>
    %213 = arith.mulf %208, %212 : vector<8x32xf32>
    %c72 = arith.constant 72 : index
    %c0_57 = arith.constant 0 : index
    %214 = vector.load %arg11[%c72, %c0_57] : memref<128x128xf32, #tpu.memory_space<vmem>>, vector<8x128xf32>
    %215 = arith.truncf %213 : vector<8x32xf32> to vector<8x32xbf16>
    %cst_58 = arith.constant dense<0.000000e+00> : vector<8x128xf32>
    %216 = tpu.matmul %215, %7, %cst_58 {dimension_numbers = #tpu.dot_dimension_numbers<[1], [0], [0], [1], [0, 0, 1, 1], [], []>} : vector<8x32xbf16>, vector<32x128xbf16>, vector<8x128xf32> -> vector<8x128xf32>
    %217 = arith.addf %214, %216 : vector<8x128xf32>
    %cst_59 = arith.constant 5.000000e-01 : f32
    %218 = vector.broadcast %cst_59 : f32 to vector<8x128xf32>
    %219 = arith.mulf %218, %217 : vector<8x128xf32>
    %220 = arith.select %13, %217, %219 : vector<8x128xi1>, vector<8x128xf32>
    %221 = math.tanh %220 : vector<8x128xf32>
    %cst_60 = arith.constant 5.000000e-01 : f32
    %222 = vector.broadcast %cst_60 : f32 to vector<8x128xf32>
    %223 = arith.mulf %222, %221 : vector<8x128xf32>
    %cst_61 = arith.constant 5.000000e-01 : f32
    %224 = vector.broadcast %cst_61 : f32 to vector<8x128xf32>
    %225 = arith.addf %223, %224 : vector<8x128xf32>
    %226 = arith.select %13, %221, %225 : vector<8x128xi1>, vector<8x128xf32>
    %227 = vector.extract_strided_slice %226 {offsets = [0, 0], sizes = [8, 32], strides = [1, 1]} : vector<8x128xf32> to vector<8x32xf32>
    %228 = vector.extract_strided_slice %226 {offsets = [0, 32], sizes = [8, 32], strides = [1, 1]} : vector<8x128xf32> to vector<8x32xf32>
    %229 = vector.extract_strided_slice %226 {offsets = [0, 64], sizes = [8, 32], strides = [1, 1]} : vector<8x128xf32> to vector<8x32xf32>
    %230 = vector.extract_strided_slice %226 {offsets = [0, 96], sizes = [8, 32], strides = [1, 1]} : vector<8x128xf32> to vector<8x32xf32>
    %231 = arith.mulf %228, %211 : vector<8x32xf32>
    %232 = arith.mulf %227, %229 : vector<8x32xf32>
    %233 = arith.addf %231, %232 : vector<8x32xf32>
    %234 = math.tanh %233 : vector<8x32xf32>
    %235 = arith.mulf %230, %234 : vector<8x32xf32>
    %c80 = arith.constant 80 : index
    %c0_62 = arith.constant 0 : index
    %236 = vector.load %arg11[%c80, %c0_62] : memref<128x128xf32, #tpu.memory_space<vmem>>, vector<8x128xf32>
    %237 = arith.truncf %235 : vector<8x32xf32> to vector<8x32xbf16>
    %cst_63 = arith.constant dense<0.000000e+00> : vector<8x128xf32>
    %238 = tpu.matmul %237, %7, %cst_63 {dimension_numbers = #tpu.dot_dimension_numbers<[1], [0], [0], [1], [0, 0, 1, 1], [], []>} : vector<8x32xbf16>, vector<32x128xbf16>, vector<8x128xf32> -> vector<8x128xf32>
    %239 = arith.addf %236, %238 : vector<8x128xf32>
    %cst_64 = arith.constant 5.000000e-01 : f32
    %240 = vector.broadcast %cst_64 : f32 to vector<8x128xf32>
    %241 = arith.mulf %240, %239 : vector<8x128xf32>
    %242 = arith.select %13, %239, %241 : vector<8x128xi1>, vector<8x128xf32>
    %243 = math.tanh %242 : vector<8x128xf32>
    %cst_65 = arith.constant 5.000000e-01 : f32
    %244 = vector.broadcast %cst_65 : f32 to vector<8x128xf32>
    %245 = arith.mulf %244, %243 : vector<8x128xf32>
    %cst_66 = arith.constant 5.000000e-01 : f32
    %246 = vector.broadcast %cst_66 : f32 to vector<8x128xf32>
    %247 = arith.addf %245, %246 : vector<8x128xf32>
    %248 = arith.select %13, %243, %247 : vector<8x128xi1>, vector<8x128xf32>
    %249 = vector.extract_strided_slice %248 {offsets = [0, 0], sizes = [8, 32], strides = [1, 1]} : vector<8x128xf32> to vector<8x32xf32>
    %250 = vector.extract_strided_slice %248 {offsets = [0, 32], sizes = [8, 32], strides = [1, 1]} : vector<8x128xf32> to vector<8x32xf32>
    %251 = vector.extract_strided_slice %248 {offsets = [0, 64], sizes = [8, 32], strides = [1, 1]} : vector<8x128xf32> to vector<8x32xf32>
    %252 = vector.extract_strided_slice %248 {offsets = [0, 96], sizes = [8, 32], strides = [1, 1]} : vector<8x128xf32> to vector<8x32xf32>
    %253 = arith.mulf %250, %233 : vector<8x32xf32>
    %254 = arith.mulf %249, %251 : vector<8x32xf32>
    %255 = arith.addf %253, %254 : vector<8x32xf32>
    %256 = math.tanh %255 : vector<8x32xf32>
    %257 = arith.mulf %252, %256 : vector<8x32xf32>
    %c88 = arith.constant 88 : index
    %c0_67 = arith.constant 0 : index
    %258 = vector.load %arg11[%c88, %c0_67] : memref<128x128xf32, #tpu.memory_space<vmem>>, vector<8x128xf32>
    %259 = arith.truncf %257 : vector<8x32xf32> to vector<8x32xbf16>
    %cst_68 = arith.constant dense<0.000000e+00> : vector<8x128xf32>
    %260 = tpu.matmul %259, %7, %cst_68 {dimension_numbers = #tpu.dot_dimension_numbers<[1], [0], [0], [1], [0, 0, 1, 1], [], []>} : vector<8x32xbf16>, vector<32x128xbf16>, vector<8x128xf32> -> vector<8x128xf32>
    %261 = arith.addf %258, %260 : vector<8x128xf32>
    %cst_69 = arith.constant 5.000000e-01 : f32
    %262 = vector.broadcast %cst_69 : f32 to vector<8x128xf32>
    %263 = arith.mulf %262, %261 : vector<8x128xf32>
    %264 = arith.select %13, %261, %263 : vector<8x128xi1>, vector<8x128xf32>
    %265 = math.tanh %264 : vector<8x128xf32>
    %cst_70 = arith.constant 5.000000e-01 : f32
    %266 = vector.broadcast %cst_70 : f32 to vector<8x128xf32>
    %267 = arith.mulf %266, %265 : vector<8x128xf32>
    %cst_71 = arith.constant 5.000000e-01 : f32
    %268 = vector.broadcast %cst_71 : f32 to vector<8x128xf32>
    %269 = arith.addf %267, %268 : vector<8x128xf32>
    %270 = arith.select %13, %265, %269 : vector<8x128xi1>, vector<8x128xf32>
    %271 = vector.extract_strided_slice %270 {offsets = [0, 0], sizes = [8, 32], strides = [1, 1]} : vector<8x128xf32> to vector<8x32xf32>
    %272 = vector.extract_strided_slice %270 {offsets = [0, 32], sizes = [8, 32], strides = [1, 1]} : vector<8x128xf32> to vector<8x32xf32>
    %273 = vector.extract_strided_slice %270 {offsets = [0, 64], sizes = [8, 32], strides = [1, 1]} : vector<8x128xf32> to vector<8x32xf32>
    %274 = vector.extract_strided_slice %270 {offsets = [0, 96], sizes = [8, 32], strides = [1, 1]} : vector<8x128xf32> to vector<8x32xf32>
    %275 = arith.mulf %272, %255 : vector<8x32xf32>
    %276 = arith.mulf %271, %273 : vector<8x32xf32>
    %277 = arith.addf %275, %276 : vector<8x32xf32>
    %278 = math.tanh %277 : vector<8x32xf32>
    %279 = arith.mulf %274, %278 : vector<8x32xf32>
    %c96 = arith.constant 96 : index
    %c0_72 = arith.constant 0 : index
    %280 = vector.load %arg11[%c96, %c0_72] : memref<128x128xf32, #tpu.memory_space<vmem>>, vector<8x128xf32>
    %281 = arith.truncf %279 : vector<8x32xf32> to vector<8x32xbf16>
    %cst_73 = arith.constant dense<0.000000e+00> : vector<8x128xf32>
    %282 = tpu.matmul %281, %7, %cst_73 {dimension_numbers = #tpu.dot_dimension_numbers<[1], [0], [0], [1], [0, 0, 1, 1], [], []>} : vector<8x32xbf16>, vector<32x128xbf16>, vector<8x128xf32> -> vector<8x128xf32>
    %283 = arith.addf %280, %282 : vector<8x128xf32>
    %cst_74 = arith.constant 5.000000e-01 : f32
    %284 = vector.broadcast %cst_74 : f32 to vector<8x128xf32>
    %285 = arith.mulf %284, %283 : vector<8x128xf32>
    %286 = arith.select %13, %283, %285 : vector<8x128xi1>, vector<8x128xf32>
    %287 = math.tanh %286 : vector<8x128xf32>
    %cst_75 = arith.constant 5.000000e-01 : f32
    %288 = vector.broadcast %cst_75 : f32 to vector<8x128xf32>
    %289 = arith.mulf %288, %287 : vector<8x128xf32>
    %cst_76 = arith.constant 5.000000e-01 : f32
    %290 = vector.broadcast %cst_76 : f32 to vector<8x128xf32>
    %291 = arith.addf %289, %290 : vector<8x128xf32>
    %292 = arith.select %13, %287, %291 : vector<8x128xi1>, vector<8x128xf32>
    %293 = vector.extract_strided_slice %292 {offsets = [0, 0], sizes = [8, 32], strides = [1, 1]} : vector<8x128xf32> to vector<8x32xf32>
    %294 = vector.extract_strided_slice %292 {offsets = [0, 32], sizes = [8, 32], strides = [1, 1]} : vector<8x128xf32> to vector<8x32xf32>
    %295 = vector.extract_strided_slice %292 {offsets = [0, 64], sizes = [8, 32], strides = [1, 1]} : vector<8x128xf32> to vector<8x32xf32>
    %296 = vector.extract_strided_slice %292 {offsets = [0, 96], sizes = [8, 32], strides = [1, 1]} : vector<8x128xf32> to vector<8x32xf32>
    %297 = arith.mulf %294, %277 : vector<8x32xf32>
    %298 = arith.mulf %293, %295 : vector<8x32xf32>
    %299 = arith.addf %297, %298 : vector<8x32xf32>
    %300 = math.tanh %299 : vector<8x32xf32>
    %301 = arith.mulf %296, %300 : vector<8x32xf32>
    %c104 = arith.constant 104 : index
    %c0_77 = arith.constant 0 : index
    %302 = vector.load %arg11[%c104, %c0_77] : memref<128x128xf32, #tpu.memory_space<vmem>>, vector<8x128xf32>
    %303 = arith.truncf %301 : vector<8x32xf32> to vector<8x32xbf16>
    %cst_78 = arith.constant dense<0.000000e+00> : vector<8x128xf32>
    %304 = tpu.matmul %303, %7, %cst_78 {dimension_numbers = #tpu.dot_dimension_numbers<[1], [0], [0], [1], [0, 0, 1, 1], [], []>} : vector<8x32xbf16>, vector<32x128xbf16>, vector<8x128xf32> -> vector<8x128xf32>
    %305 = arith.addf %302, %304 : vector<8x128xf32>
    %cst_79 = arith.constant 5.000000e-01 : f32
    %306 = vector.broadcast %cst_79 : f32 to vector<8x128xf32>
    %307 = arith.mulf %306, %305 : vector<8x128xf32>
    %308 = arith.select %13, %305, %307 : vector<8x128xi1>, vector<8x128xf32>
    %309 = math.tanh %308 : vector<8x128xf32>
    %cst_80 = arith.constant 5.000000e-01 : f32
    %310 = vector.broadcast %cst_80 : f32 to vector<8x128xf32>
    %311 = arith.mulf %310, %309 : vector<8x128xf32>
    %cst_81 = arith.constant 5.000000e-01 : f32
    %312 = vector.broadcast %cst_81 : f32 to vector<8x128xf32>
    %313 = arith.addf %311, %312 : vector<8x128xf32>
    %314 = arith.select %13, %309, %313 : vector<8x128xi1>, vector<8x128xf32>
    %315 = vector.extract_strided_slice %314 {offsets = [0, 0], sizes = [8, 32], strides = [1, 1]} : vector<8x128xf32> to vector<8x32xf32>
    %316 = vector.extract_strided_slice %314 {offsets = [0, 32], sizes = [8, 32], strides = [1, 1]} : vector<8x128xf32> to vector<8x32xf32>
    %317 = vector.extract_strided_slice %314 {offsets = [0, 64], sizes = [8, 32], strides = [1, 1]} : vector<8x128xf32> to vector<8x32xf32>
    %318 = vector.extract_strided_slice %314 {offsets = [0, 96], sizes = [8, 32], strides = [1, 1]} : vector<8x128xf32> to vector<8x32xf32>
    %319 = arith.mulf %316, %299 : vector<8x32xf32>
    %320 = arith.mulf %315, %317 : vector<8x32xf32>
    %321 = arith.addf %319, %320 : vector<8x32xf32>
    %322 = math.tanh %321 : vector<8x32xf32>
    %323 = arith.mulf %318, %322 : vector<8x32xf32>
    %c112 = arith.constant 112 : index
    %c0_82 = arith.constant 0 : index
    %324 = vector.load %arg11[%c112, %c0_82] : memref<128x128xf32, #tpu.memory_space<vmem>>, vector<8x128xf32>
    %325 = arith.truncf %323 : vector<8x32xf32> to vector<8x32xbf16>
    %cst_83 = arith.constant dense<0.000000e+00> : vector<8x128xf32>
    %326 = tpu.matmul %325, %7, %cst_83 {dimension_numbers = #tpu.dot_dimension_numbers<[1], [0], [0], [1], [0, 0, 1, 1], [], []>} : vector<8x32xbf16>, vector<32x128xbf16>, vector<8x128xf32> -> vector<8x128xf32>
    %327 = arith.addf %324, %326 : vector<8x128xf32>
    %cst_84 = arith.constant 5.000000e-01 : f32
    %328 = vector.broadcast %cst_84 : f32 to vector<8x128xf32>
    %329 = arith.mulf %328, %327 : vector<8x128xf32>
    %330 = arith.select %13, %327, %329 : vector<8x128xi1>, vector<8x128xf32>
    %331 = math.tanh %330 : vector<8x128xf32>
    %cst_85 = arith.constant 5.000000e-01 : f32
    %332 = vector.broadcast %cst_85 : f32 to vector<8x128xf32>
    %333 = arith.mulf %332, %331 : vector<8x128xf32>
    %cst_86 = arith.constant 5.000000e-01 : f32
    %334 = vector.broadcast %cst_86 : f32 to vector<8x128xf32>
    %335 = arith.addf %333, %334 : vector<8x128xf32>
    %336 = arith.select %13, %331, %335 : vector<8x128xi1>, vector<8x128xf32>
    %337 = vector.extract_strided_slice %336 {offsets = [0, 0], sizes = [8, 32], strides = [1, 1]} : vector<8x128xf32> to vector<8x32xf32>
    %338 = vector.extract_strided_slice %336 {offsets = [0, 32], sizes = [8, 32], strides = [1, 1]} : vector<8x128xf32> to vector<8x32xf32>
    %339 = vector.extract_strided_slice %336 {offsets = [0, 64], sizes = [8, 32], strides = [1, 1]} : vector<8x128xf32> to vector<8x32xf32>
    %340 = vector.extract_strided_slice %336 {offsets = [0, 96], sizes = [8, 32], strides = [1, 1]} : vector<8x128xf32> to vector<8x32xf32>
    %341 = arith.mulf %338, %321 : vector<8x32xf32>
    %342 = arith.mulf %337, %339 : vector<8x32xf32>
    %343 = arith.addf %341, %342 : vector<8x32xf32>
    %344 = math.tanh %343 : vector<8x32xf32>
    %345 = arith.mulf %340, %344 : vector<8x32xf32>
    %c120 = arith.constant 120 : index
    %c0_87 = arith.constant 0 : index
    %346 = vector.load %arg11[%c120, %c0_87] : memref<128x128xf32, #tpu.memory_space<vmem>>, vector<8x128xf32>
    %347 = arith.truncf %345 : vector<8x32xf32> to vector<8x32xbf16>
    %cst_88 = arith.constant dense<0.000000e+00> : vector<8x128xf32>
    %348 = tpu.matmul %347, %7, %cst_88 {dimension_numbers = #tpu.dot_dimension_numbers<[1], [0], [0], [1], [0, 0, 1, 1], [], []>} : vector<8x32xbf16>, vector<32x128xbf16>, vector<8x128xf32> -> vector<8x128xf32>
    %349 = arith.addf %346, %348 : vector<8x128xf32>
    %cst_89 = arith.constant 5.000000e-01 : f32
    %350 = vector.broadcast %cst_89 : f32 to vector<8x128xf32>
    %351 = arith.mulf %350, %349 : vector<8x128xf32>
    %352 = arith.select %13, %349, %351 : vector<8x128xi1>, vector<8x128xf32>
    %353 = math.tanh %352 : vector<8x128xf32>
    %cst_90 = arith.constant 5.000000e-01 : f32
    %354 = vector.broadcast %cst_90 : f32 to vector<8x128xf32>
    %355 = arith.mulf %354, %353 : vector<8x128xf32>
    %cst_91 = arith.constant 5.000000e-01 : f32
    %356 = vector.broadcast %cst_91 : f32 to vector<8x128xf32>
    %357 = arith.addf %355, %356 : vector<8x128xf32>
    %358 = arith.select %13, %353, %357 : vector<8x128xi1>, vector<8x128xf32>
    %359 = vector.extract_strided_slice %358 {offsets = [0, 0], sizes = [8, 32], strides = [1, 1]} : vector<8x128xf32> to vector<8x32xf32>
    %360 = vector.extract_strided_slice %358 {offsets = [0, 32], sizes = [8, 32], strides = [1, 1]} : vector<8x128xf32> to vector<8x32xf32>
    %361 = vector.extract_strided_slice %358 {offsets = [0, 64], sizes = [8, 32], strides = [1, 1]} : vector<8x128xf32> to vector<8x32xf32>
    %362 = vector.extract_strided_slice %358 {offsets = [0, 96], sizes = [8, 32], strides = [1, 1]} : vector<8x128xf32> to vector<8x32xf32>
    %363 = arith.mulf %360, %343 : vector<8x32xf32>
    %364 = arith.mulf %359, %361 : vector<8x32xf32>
    %365 = arith.addf %363, %364 : vector<8x32xf32>
    %366 = math.tanh %365 : vector<8x32xf32>
    %367 = arith.mulf %362, %366 : vector<8x32xf32>
    %c0_92 = arith.constant 0 : index
    %c0_93 = arith.constant 0 : index
    %368 = vector.load %arg4[%c0_92, %c0_93] : memref<32x32xf32, #tpu.memory_space<vmem>>, vector<32x32xf32>
    %cst_94 = arith.constant dense<0.000000e+00> : vector<8x32xf32>
    %369 = tpu.matmul %367, %368, %cst_94 {dimension_numbers = #tpu.dot_dimension_numbers<[1], [0], [0], [1], [0, 0, 1, 1], [], []>} : vector<8x32xf32>, vector<32x32xf32>, vector<8x32xf32> -> vector<8x32xf32>
    %c0_95 = arith.constant 0 : index
    %c0_96 = arith.constant 0 : index
    %370 = vector.load %arg5[%c0_95, %c0_96] : memref<1x32xf32, #tpu.memory_space<vmem>>, vector<1x32xf32>
    %371 = vector.broadcast %370 : vector<1x32xf32> to vector<8x32xf32>
    %372 = arith.addf %369, %371 : vector<8x32xf32>
    %cst_97 = arith.constant 0.000000e+00 : f32
    %373 = vector.broadcast %cst_97 : f32 to vector<8x32xf32>
    %374 = arith.maximumf %372, %373 : vector<8x32xf32>
    %c0_98 = arith.constant 0 : index
    %c0_99 = arith.constant 0 : index
    %375 = vector.load %arg6[%c0_98, %c0_99] : memref<32x16xf32, #tpu.memory_space<vmem>>, vector<32x16xf32>
    %cst_100 = arith.constant dense<0.000000e+00> : vector<8x16xf32>
    %376 = tpu.matmul %374, %375, %cst_100 {dimension_numbers = #tpu.dot_dimension_numbers<[1], [0], [0], [1], [0, 0, 1, 1], [], []>} : vector<8x32xf32>, vector<32x16xf32>, vector<8x16xf32> -> vector<8x16xf32>
    %c0_101 = arith.constant 0 : index
    %c0_102 = arith.constant 0 : index
    %377 = vector.load %arg7[%c0_101, %c0_102] : memref<1x16xf32, #tpu.memory_space<vmem>>, vector<1x16xf32>
    %378 = vector.broadcast %377 : vector<1x16xf32> to vector<8x16xf32>
    %379 = arith.addf %376, %378 : vector<8x16xf32>
    %cst_103 = arith.constant 0.000000e+00 : f32
    %380 = vector.broadcast %cst_103 : f32 to vector<8x16xf32>
    %381 = arith.maximumf %379, %380 : vector<8x16xf32>
    %c0_104 = arith.constant 0 : index
    %c0_105 = arith.constant 0 : index
    %382 = vector.load %arg8[%c0_104, %c0_105] : memref<16x2xf32, #tpu.memory_space<vmem>>, vector<16x2xf32>
    %cst_106 = arith.constant dense<0.000000e+00> : vector<8x2xf32>
    %383 = tpu.matmul %381, %382, %cst_106 {dimension_numbers = #tpu.dot_dimension_numbers<[1], [0], [0], [1], [0, 0, 1, 1], [], []>} : vector<8x16xf32>, vector<16x2xf32>, vector<8x2xf32> -> vector<8x2xf32>
    %c0_107 = arith.constant 0 : index
    %c0_108 = arith.constant 0 : index
    %384 = vector.load %arg9[%c0_107, %c0_108] : memref<1x2xf32, #tpu.memory_space<vmem>>, vector<1x2xf32>
    %385 = vector.broadcast %384 : vector<1x2xf32> to vector<8x2xf32>
    %386 = arith.addf %383, %385 : vector<8x2xf32>
    %c0_109 = arith.constant 0 : index
    %c0_110 = arith.constant 0 : index
    %387 = vector.load %arg10[%c0_109, %c0_110] : memref<8x2xf32, #tpu.memory_space<vmem>>, vector<8x2xf32>
    tpu.vector_store %arg10[%c0_109, %c0_110], %386 {strides = array<i32>} : memref<8x2xf32, #tpu.memory_space<vmem>>, vector<8x2xf32>,
    return
  }
}

</mosaic_0001>

<bundles_post_ra>
// kernel: tpu_custom_call.1
= control target key start
LH: loop header
LB: loop body
LE: loop exit
PB: predicated region body
PF: predicated region fallthrough
CT: control target
= control target key end

     0   :  { %vm60_vm0 = vcmask 64512   ;;  %v2075_v1 = vmov 0.0   ;;  %vm2076_vm1 = vmmov 0   ;;  %v2077_v6 = vmov 0   ;;  %s2078_s24 = smov 64   ;;  %s2079_s25 = smov 32   ;;  %s2573_s1 = inlined_call_operand.vmem [shape: f32[8,128], index: 1, kind: input, shape index: {}]   ;;  %s2574_s0 = inlined_call_operand.vmem [shape: f32[128,8], index: 0, kind: input, shape index: {}]   ;;  %s2575_s2 = inlined_call_operand.vmem [shape: bf16[32,128], index: 2, kind: input, shape index: {}]   ;;  %s2576_s3 = inlined_call_operand.vmem [shape: f32[1,128], index: 3, kind: input, shape index: {}]   ;;  %s2577_s4 = inlined_call_operand.vmem [shape: f32[32,32], index: 4, kind: input, shape index: {}]   ;;  %s2578_s6 = inlined_call_operand.vmem [shape: f32[32,16], index: 6, kind: input, shape index: {}]   ;;  %s2579_s5 = inlined_call_operand.vmem [shape: f32[1,32], index: 5, kind: input, shape index: {}]   ;;  %s2580_s8 = inlined_call_operand.vmem [shape: f32[16,2], index: 8, kind: input, shape index: {}]   ;;  %s2581_s7 = inlined_call_operand.vmem [shape: f32[1,16], index: 7, kind: input, shape index: {}]   ;;  %s2582_s9 = inlined_call_operand.vmem [shape: f32[1,2], index: 9, kind: input, shape index: {}]   ;;  %s2583_s10 = inlined_call_operand.vmem [shape: f32[8,2], index: 10, kind: output, shape index: {}]  }
   0x1   :  { %v52_v0 = vld [vmem:[%s2573_s1] sm:$0xff]  ;;  %1845 = vmatprep.subr.bf16.mxu1 %v2075_v1  ;;  %1849 = vmatprep.mubr.msk.bf16.mxu1 %vm2076_vm1, %v2075_v1  ;;  %v2148_v3 = vld [vmem:[%s2575_s2 + $0x8] sm:$0xff]   ;;  %v274_v7 = vlaneseq  ;;  %vm292_vm5 = vcmask 261120   ;;  %v38_v52 = vld [vmem:[%s2574_s0 + $0x10] sm:$0xff]  ;;  %vm1621_vm6 = vcmask 130048   ;;  %vm1695_vm7 = vcmask 15360  }
   0x2   :  { %v36_v2 = vld [vmem:[%s2574_s0] sm:$0xff]  ;;  %1819 = vmatprep.subr.mxu0 %v52_v0  ;;  %v37_v4 = vld [vmem:[%s2574_s0 + $0x8] sm:$0xff]  ;;  %1846 = vmatpush3.bf16.msra.mxu1 %v2148_v3  ;;  %v39_v53 = vld [vmem:[%s2574_s0 + $0x18] sm:$0xff] }
   0x3   :  { %1821 = vmatprep.mubr.msk.f32.mxu0 %vm60_vm0, %v36_v2  ;;  %1820 = vmatpush3.msra.mxu0 %v52_v0  ;;  %v2158_v5 = vld [vmem:[%s2575_s2] sm:$0xff]   ;;  %v275_v9 = vand.u32 127, %v274_v7  ;;  %v1441_v15 = vld [vmem:[%s2577_s4 + $0x8] sm:$0xff] }
   0x4   :  { %1822 = vmatmul.mubr.msk.f32.vlgmr.msra.gmra.mxu0 %vm60_vm0, %v37_v4  ;;  %1847 = vmatprep.subr.bf16.mxu1 %v2075_v1  ;;  %v2177_v10 = vld [vmem:[%s2576_s3] ss:$0 sm:$0xff] }
   0x5   :  { %1877 = vmatprep.subr.bf16.mxu0 %v2075_v1  ;;  %vm276_vm2 = vcmp.ge.s32.totalorder %v275_v9, 64  ;;  %vm277_vm3 = vcmp.lt.s32.totalorder %v275_v9, 96  ;;  %1824 = vmatprep.mubr.msk.f32.mxu0 %vm60_vm0, %v38_v52  ;;  %v50_v52 = vld [vmem:[%s2574_s0 + $0x70] sm:$0xff] }
   0x6   :  { %1878 = vmatpush3.bf16.msra.mxu0 %v2148_v3  ;;  %1848 = vmatpush3.bf16.msra.mxu1 %v2158_v5  ;;  %vm2180_vm4 = vmand %vm276_vm2, %vm277_vm3 }
   0x7   :  { %1879 = vmatprep.subr.bf16.mxu0 %v2075_v1  ;;  %1853 = vmatprep.subr.bf16.mxu1 %v2075_v1 }
   0x8   :  { %1825 = vmatmul.mubr.msk.f32.gmra.mxu0 %vm60_vm0, %v39_v53  ;;  %v51_v53 = vld [vmem:[%s2574_s0 + $0x78] sm:$0xff] }
   0x9   :  { %1850 = vmatmul.mubr.bf16.vlgmr.msra.gmra.mxu1 %v2077_v6 }
   0xa   :  { %1880 = vmatpush3.bf16.msra.mxu0 %v2158_v5  ;;  %1854 = vmatpush3.bf16.msra.mxu1 %v2148_v3 }
   0xb   :  { %1893 = vmatprep.subr.bf16.mxu0 %v2075_v1  ;;  %1857 = vmatprep.mubr.msk.bf16.mxu1 %vm2076_vm1, %v2075_v1 }
   0xc   :  { %1855 = vmatprep.subr.bf16.mxu1 %v2075_v1 }
   0xe   :  { %1856 = vmatpush3.bf16.msra.mxu1 %v2158_v5 }
   0xf   :  { %1861 = vmatprep.subr.bf16.mxu1 %v2075_v1 }
  0xc4   :  { %v1823_v8 = vpop.f32.mrf.mxu0 }
  0xc5   :  { %v181_v35 = vadd.f32 %v1823_v8, %v2177_v10 }
  0xc6   :  { %v175_v11 = vpop.f32.mrf.mxu0 }
  0xc7   :  { %v176_v12 = vadd.f32 %v2177_v10, %v175_v11 }
  0xc8   :  { %v1826_v59 = vpop.f32.mrf.mxu0 }
  0xc9   :  { %v330_v13 = vpop.f32.mrf.mxu1 }
  0xca   :  { %v336_v14 = vadd.f32 %v330_v13, %v176_v12  ;;  %v185_v60 = vpop.f32.mrf.mxu0 }
  0xcb   :  { %v1851_v16 = vpop.f32.mrf.mxu1  ;;  %v186_v61 = vadd.f32 %v2177_v10, %v185_v60 }
  0xcc   :  { %v337_v17 = vmul.f32 0.5, %v336_v14 }
  0xcd   :  { %v333_v18 = vpop.f32.mrf.mxu1 }
  0xce   :  { %v338_v19 = vsel %vm2180_vm4, %v336_v14, %v337_v17 }
  0xcf   :  { %2009 = vtanh.f32 %v338_v19  ;;  %v1852_v20 = vpop.f32.mrf.mxu1 }
  0xdc   :  { %v2010_v21 = vpop.eup %2009 }
  0xdd   :  { %v340_v22 = vmul.f32 0.5, %v2010_v21 }
  0xdf   :  { %v341_v23 = vadd.f32 0.5, %v340_v22 }
  0xe1   :  { %v342_v24 = vsel %vm2180_vm4, %v2010_v21, %v341_v23 }
  0xe2   :  { %345 = vrot.lane.b32.xlu0 %v342_v24, %s2078_s24  ;;  %v343_v27 = vmul.f32 0.0, %v342_v24 }
 0x154   :  { %v346_v25 = vpop.permute.xlu0 %345 }
 0x155   :  { %v348_v26 = vmul.f32 %v346_v25, %v342_v24 }
 0x157   :  { %350 = vrot.lane.b32.xlu0 %v348_v26, %s2079_s25 }
 0x1c9   :  { %v351_v28 = vpop.permute.xlu0 %350 }
 0x1ca   :  { %v353_v29 = vadd.f32 %v351_v28, %v343_v27 }
 0x1cc   :  { %2011 = vtanh.f32 %v353_v29 }
 0x1d9   :  { %v2012_v30 = vpop.eup %2011 }
 0x1da   :  { %356 = vrot.lane.b32.xlu1 %v2012_v30, %s2078_s24 }
 0x24c   :  { %v357_v31 = vpop.permute.xlu1 %356 }
 0x24d   :  { %v359_v32 = vmul.f32 %v357_v31, %v342_v24  ;;  %v191_v24 = vadd.f32 %v1826_v59, %v2177_v10 }
 0x24f   :  { %v361_v33 = vpack.c.bf16 %v359_v32, %v359_v32 }
 0x251   :  { %363 = vrot.lane.b32.xlu1 %v361_v33, %s2079_s25 }
 0x2c3   :  { %v364_v34 = vpop.permute.xlu1 %363 }
 0x2c4   :  { %1858 = vmatmul.mubr.msk.bf16.vlgmr.msra.gmra.mxu1 %vm292_vm5, %v364_v34 }
 0x2c5   :  { %1862 = vmatpush3.bf16.msra.mxu1 %v2148_v3  ;;  %1865 = vmatprep.mubr.msk.bf16.mxu1 %vm2076_vm1, %v2075_v1 }
 0x2c6   :  { %1863 = vmatprep.subr.bf16.mxu1 %v2075_v1 }
 0x2c9   :  { %1864 = vmatpush3.bf16.msra.mxu1 %v2158_v5 }
 0x2ca   :  { %1869 = vmatprep.subr.bf16.mxu1 %v2075_v1 }
 0x384   :  { %v402_v36 = vpop.f32.mrf.mxu1 }
 0x385   :  { %v408_v37 = vadd.f32 %v402_v36, %v181_v35 }
 0x386   :  { %v1859_v38 = vpop.f32.mrf.mxu1 }
 0x387   :  { %v409_v39 = vmul.f32 0.5, %v408_v37 }
 0x388   :  { %v405_v40 = vpop.f32.mrf.mxu1 }
 0x389   :  { %v410_v41 = vsel %vm2180_vm4, %v408_v37, %v409_v39 }
 0x38a   :  { %2013 = vtanh.f32 %v410_v41  ;;  %v1860_v42 = vpop.f32.mrf.mxu1  ;;  %v40_v41 = vld [vmem:[%s2574_s0 + $0x20] sm:$0xff] }
 0x38b   :  { %v41_v42 = vld [vmem:[%s2574_s0 + $0x28] sm:$0xff]  ;;  %1827 = vmatprep.mubr.msk.f32.mxu0 %vm60_vm0, %v40_v41 }
 0x38c   :  { %1828 = vmatmul.mubr.msk.f32.gmra.mxu0 %vm60_vm0, %v41_v42 }
 0x397   :  { %v2014_v43 = vpop.eup %2013 }
 0x398   :  { %v412_v44 = vmul.f32 0.5, %v2014_v43 }
 0x39a   :  { %v413_v45 = vadd.f32 0.5, %v412_v44  ;;  %v43_v44 = vld [vmem:[%s2574_s0 + $0x38] sm:$0xff] }
 0x39c   :  { %v414_v46 = vsel %vm2180_vm4, %v2014_v43, %v413_v45  ;;  %v42_v43 = vld [vmem:[%s2574_s0 + $0x30] sm:$0xff]  ;;  %v44_v45 = vld [vmem:[%s2574_s0 + $0x40] sm:$0xff] }
 0x39d   :  { %417 = vrot.lane.b32.xlu0 %v414_v46, %s2078_s24  ;;  %v415_v49 = vmul.f32 %v414_v46, %v353_v29  ;;  %1830 = vmatprep.mubr.msk.f32.mxu0 %vm60_vm0, %v42_v43 }
 0x39e   :  { %1831 = vmatmul.mubr.msk.f32.gmra.mxu0 %vm60_vm0, %v43_v44 }
 0x39f   :  { %1833 = vmatprep.mubr.msk.f32.mxu0 %vm60_vm0, %v44_v45 }
 0x40f   :  { %v418_v47 = vpop.permute.xlu0 %417 }
 0x410   :  { %v420_v48 = vmul.f32 %v418_v47, %v414_v46 }
 0x412   :  { %422 = vrot.lane.b32.xlu1 %v420_v48, %s2079_s25  ;;  %v46_v48 = vld [vmem:[%s2574_s0 + $0x50] sm:$0xff] }
 0x484   :  { %v423_v50 = vpop.permute.xlu1 %422 }
 0x485   :  { %v425_v51 = vadd.f32 %v423_v50, %v415_v49  ;;  %v47_v49 = vld [vmem:[%s2574_s0 + $0x58] sm:$0xff]  ;;  %v48_v50 = vld [vmem:[%s2574_s0 + $0x60] sm:$0xff] }
 0x487   :  { %2015 = vtanh.f32 %v425_v51 }
 0x494   :  { %v2016_v54 = vpop.eup %2015 }
 0x495   :  { %428 = vrot.lane.b32.xlu0 %v2016_v54, %s2078_s24 }
 0x507   :  { %v429_v55 = vpop.permute.xlu0 %428 }
 0x508   :  { %v431_v56 = vmul.f32 %v429_v55, %v414_v46  ;;  %v45_v46 = vld [vmem:[%s2574_s0 + $0x48] sm:$0xff] }
 0x509   :  { %1834 = vmatmul.mubr.msk.f32.gmra.mxu0 %vm60_vm0, %v45_v46 }
 0x50a   :  { %v433_v57 = vpack.c.bf16 %v431_v56, %v431_v56  ;;  %1836 = vmatprep.mubr.msk.f32.mxu0 %vm60_vm0, %v46_v48 }
 0x50c   :  { %435 = vrot.lane.b32.xlu1 %v433_v57, %s2079_s25 }
 0x50d   :  { %1837 = vmatmul.mubr.msk.f32.gmra.mxu0 %vm60_vm0, %v47_v49 }
 0x50e   :  { %1839 = vmatprep.mubr.msk.f32.mxu0 %vm60_vm0, %v48_v50 }
 0x57e   :  { %v436_v58 = vpop.permute.xlu1 %435 }
 0x57f   :  { %1866 = vmatmul.mubr.msk.bf16.vlgmr.msra.gmra.mxu1 %vm292_vm5, %v436_v58  ;;  %v1829_v58 = vpop.f32.mrf.mxu0 }
 0x580   :  { %1870 = vmatpush3.bf16.msra.mxu1 %v2148_v3  ;;  %1873 = vmatprep.mubr.msk.bf16.mxu1 %vm2076_vm1, %v2075_v1 }
 0x581   :  { %1871 = vmatprep.subr.bf16.mxu1 %v2075_v1  ;;  %v195_v59 = vpop.f32.mrf.mxu0 }
 0x583   :  { %v2308_v60 = vpop.f32.mrf.mxu0 }
 0x584   :  { %1872 = vmatpush3.bf16.msra.mxu1 %v2158_v5 }
 0x585   :  { %1885 = vmatprep.subr.bf16.mxu1 %v2075_v1 }
 0x63f   :  { %v474_v62 = vpop.f32.mrf.mxu1 }
 0x640   :  { %v480_v63 = vadd.f32 %v474_v62, %v186_v61  ;;  %v2310_v61 = vpop.f32.mrf.mxu0 }
 0x641   :  { %v1867_v0 = vpop.f32.mrf.mxu1 }
 0x642   :  { %v481_v2 = vmul.f32 0.5, %v480_v63  ;;  %v2312_v62 = vpop.f32.mrf.mxu0 }
 0x643   :  { %v477_v4 = vpop.f32.mrf.mxu1 }
 0x644   :  { %v482_v6 = vsel %vm2180_vm4, %v480_v63, %v481_v2  ;;  %v2314_v63 = vpop.f32.mrf.mxu0 }
 0x645   :  { %2017 = vtanh.f32 %v482_v6  ;;  %v1868_v7 = vpop.f32.mrf.mxu1 }
 0x646   :  { %v2316_v0 = vpop.f32.mrf.mxu0 }
 0x648   :  { %v2318_v2 = vpop.f32.mrf.mxu0 }
 0x652   :  { %v2018_v8 = vpop.eup %2017 }
 0x653   :  { %v484_v9 = vmul.f32 0.5, %v2018_v8 }
 0x655   :  { %v485_v11 = vadd.f32 0.5, %v484_v9  ;;  %v196_v9 = vadd.f32 %v2177_v10, %v195_v59 }
 0x657   :  { %v486_v12 = vsel %vm2180_vm4, %v2018_v8, %v485_v11 }
 0x658   :  { %489 = vrot.lane.b32.xlu0 %v486_v12, %s2078_s24  ;;  %v487_v16 = vmul.f32 %v486_v12, %v425_v51  ;;  %v49_v51 = vld [vmem:[%s2574_s0 + $0x68] sm:$0xff] }
 0x659   :  { %1840 = vmatmul.mubr.msk.f32.gmra.mxu0 %vm60_vm0, %v49_v51 }
 0x65a   :  { %1842 = vmatprep.mubr.msk.f32.mxu0 %vm60_vm0, %v50_v52 }
 0x65d   :  { %1843 = vmatmul.mubr.msk.f32.gmra.mxu0 %vm60_vm0, %v51_v53 }
 0x65e   :  { %1881 = vmatprep.mubr.msk.bf16.mxu0 %vm2076_vm1, %v2075_v1 }
 0x6ca   :  { %v490_v13 = vpop.permute.xlu0 %489 }
 0x6cb   :  { %v492_v14 = vmul.f32 %v490_v13, %v486_v12 }
 0x6cd   :  { %494 = vrot.lane.b32.xlu1 %v492_v14, %s2079_s25 }
 0x719   :  { %v2320_v4 = vpop.f32.mrf.mxu0 }
 0x71b   :  { %v2322_v6 = vpop.f32.mrf.mxu0 }
 0x71d   :  { %v2324_v7 = vpop.f32.mrf.mxu0 }
 0x71f   :  { %v2326_v8 = vpop.f32.mrf.mxu0 }
 0x73f   :  { %v495_v17 = vpop.permute.xlu1 %494 }
 0x740   :  { %v497_v18 = vadd.f32 %v495_v17, %v487_v16 }
 0x742   :  { %2019 = vtanh.f32 %v497_v18 }
 0x74f   :  { %v2020_v19 = vpop.eup %2019 }
 0x750   :  { %500 = vrot.lane.b32.xlu0 %v2020_v19, %s2078_s24 }
 0x7c2   :  { %v501_v20 = vpop.permute.xlu0 %500 }
 0x7c3   :  { %v503_v21 = vmul.f32 %v501_v20, %v486_v12 }
 0x7c5   :  { %v505_v22 = vpack.c.bf16 %v503_v21, %v503_v21 }
 0x7c7   :  { %507 = vrot.lane.b32.xlu1 %v505_v22, %s2079_s25 }
 0x839   :  { %v508_v23 = vpop.permute.xlu1 %507 }
 0x83a   :  { %1874 = vmatmul.mubr.msk.bf16.vlgmr.msra.gmra.mxu1 %vm292_vm5, %v508_v23 }
 0x83b   :  { %1886 = vmatpush3.bf16.msra.mxu1 %v2148_v3  ;;  %1889 = vmatprep.mubr.msk.bf16.mxu1 %vm2076_vm1, %v2075_v1 }
 0x83c   :  { %1887 = vmatprep.subr.bf16.mxu1 %v2075_v1 }
 0x83f   :  { %1888 = vmatpush3.bf16.msra.mxu1 %v2158_v5 }
 0x840   :  { %1901 = vmatprep.subr.bf16.mxu1 %v2075_v1 }
 0x8fa   :  { %v546_v25 = vpop.f32.mrf.mxu1 }
 0x8fb   :  { %v552_v26 = vadd.f32 %v546_v25, %v191_v24 }
 0x8fc   :  { %v1875_v27 = vpop.f32.mrf.mxu1 }
 0x8fd   :  { %v553_v28 = vmul.f32 0.5, %v552_v26 }
 0x8fe   :  { %v549_v29 = vpop.f32.mrf.mxu1 }
 0x8ff   :  { %v554_v30 = vsel %vm2180_vm4, %v552_v26, %v553_v28 }
 0x900   :  { %2021 = vtanh.f32 %v554_v30  ;;  %v1876_v31 = vpop.f32.mrf.mxu1 }
 0x90d   :  { %v2022_v32 = vpop.eup %2021 }
 0x90e   :  { %v556_v33 = vmul.f32 0.5, %v2022_v32 }
 0x910   :  { %v557_v34 = vadd.f32 0.5, %v556_v33  ;;  %v201_v33 = vadd.f32 %v1829_v58, %v2177_v10 }
 0x912   :  { %v558_v35 = vsel %vm2180_vm4, %v2022_v32, %v557_v34 }
 0x913   :  { %561 = vrot.lane.b32.xlu0 %v558_v35, %s2078_s24  ;;  %v559_v38 = vmul.f32 %v558_v35, %v497_v18 }
 0x985   :  { %v562_v36 = vpop.permute.xlu0 %561 }
 0x986   :  { %v564_v37 = vmul.f32 %v562_v36, %v558_v35 }
 0x988   :  { %566 = vrot.lane.b32.xlu1 %v564_v37, %s2079_s25 }
 0x9fa   :  { %v567_v39 = vpop.permute.xlu1 %566 }
 0x9fb   :  { %v2246_v40 = vadd.f32 %v567_v39, %v559_v38 }
 0x9fd   :  { %2023 = vtanh.f32 %v2246_v40 }
 0xa0a   :  { %v2024_v47 = vpop.eup %2023 }
 0xa0b   :  { %572 = vrot.lane.b32.xlu0 %v2024_v47, %s2078_s24 }
 0xa7d   :  { %v573_v54 = vpop.permute.xlu0 %572 }
 0xa7e   :  { %v575_v55 = vmul.f32 %v573_v54, %v558_v35 }
 0xa80   :  { %v577_v56 = vpack.c.bf16 %v575_v55, %v575_v55  ;;  %v206_v55 = vadd.f32 %v2177_v10, %v2310_v61 }
 0xa82   :  { %579 = vrot.lane.b32.xlu1 %v577_v56, %s2079_s25 }
 0xaf4   :  { %v580_v57 = vpop.permute.xlu1 %579 }
 0xaf5   :  { %1882 = vmatmul.mubr.msk.bf16.vlgmr.msra.gmra.mxu0 %vm292_vm5, %v580_v57 }
 0xaf6   :  { %1894 = vmatpush3.bf16.msra.mxu0 %v2148_v3  ;;  %1897 = vmatprep.mubr.msk.bf16.mxu0 %vm2076_vm1, %v2075_v1 }
 0xaf7   :  { %1895 = vmatprep.subr.bf16.mxu0 %v2075_v1 }
 0xafa   :  { %1896 = vmatpush3.bf16.msra.mxu0 %v2158_v5 }
 0xafb   :  { %1909 = vmatprep.subr.bf16.mxu0 %v2075_v1 }
 0xbb5   :  { %v618_v11 = vpop.f32.mrf.mxu0 }
 0xbb6   :  { %v624_v12 = vadd.f32 %v618_v11, %v196_v9 }
 0xbb7   :  { %v1883_v13 = vpop.f32.mrf.mxu0 }
 0xbb8   :  { %v625_v14 = vmul.f32 0.5, %v624_v12 }
 0xbb9   :  { %v621_v16 = vpop.f32.mrf.mxu0 }
 0xbba   :  { %v626_v17 = vsel %vm2180_vm4, %v624_v12, %v625_v14 }
 0xbbb   :  { %2025 = vtanh.f32 %v626_v17  ;;  %v1884_v18 = vpop.f32.mrf.mxu0 }
 0xbc8   :  { %v2026_v19 = vpop.eup %2025 }
 0xbc9   :  { %v628_v20 = vmul.f32 0.5, %v2026_v19 }
 0xbcb   :  { %v629_v21 = vadd.f32 0.5, %v628_v20 }
 0xbcd   :  { %v630_v22 = vsel %vm2180_vm4, %v2026_v19, %v629_v21 }
 0xbce   :  { %633 = vrot.lane.b32.xlu0 %v630_v22, %s2078_s24  ;;  %v631_v25 = vmul.f32 %v630_v22, %v2246_v40 }
 0xc40   :  { %v634_v23 = vpop.permute.xlu0 %633 }
 0xc41   :  { %v636_v24 = vmul.f32 %v634_v23, %v630_v22 }
 0xc43   :  { %638 = vrot.lane.b32.xlu1 %v636_v24, %s2079_s25 }
 0xcb5   :  { %v639_v26 = vpop.permute.xlu1 %638 }
 0xcb6   :  { %v641_v27 = vadd.f32 %v639_v26, %v631_v25 }
 0xcb8   :  { %2027 = vtanh.f32 %v641_v27 }
 0xcc5   :  { %v2028_v28 = vpop.eup %2027 }
 0xcc6   :  { %644 = vrot.lane.b32.xlu0 %v2028_v28, %s2078_s24 }
 0xd38   :  { %v645_v29 = vpop.permute.xlu0 %644 }
 0xd39   :  { %v647_v30 = vmul.f32 %v645_v29, %v630_v22 }
 0xd3b   :  { %v649_v31 = vpack.c.bf16 %v647_v30, %v647_v30 }
 0xd3d   :  { %651 = vrot.lane.b32.xlu1 %v649_v31, %s2079_s25 }
 0xdaf   :  { %v652_v32 = vpop.permute.xlu1 %651 }
 0xdb0   :  { %1890 = vmatmul.mubr.msk.bf16.vlgmr.msra.gmra.mxu1 %vm292_vm5, %v652_v32 }
 0xdb1   :  { %1902 = vmatpush3.bf16.msra.mxu1 %v2148_v3  ;;  %1905 = vmatprep.mubr.msk.bf16.mxu1 %vm2076_vm1, %v2075_v1 }
 0xdb2   :  { %1903 = vmatprep.subr.bf16.mxu1 %v2075_v1 }
 0xdb5   :  { %1904 = vmatpush3.bf16.msra.mxu1 %v2158_v5 }
 0xdb6   :  { %1917 = vmatprep.subr.bf16.mxu1 %v2075_v1 }
 0xe70   :  { %v690_v34 = vpop.f32.mrf.mxu1 }
 0xe71   :  { %v696_v35 = vadd.f32 %v690_v34, %v201_v33 }
 0xe72   :  { %v1891_v36 = vpop.f32.mrf.mxu1 }
 0xe73   :  { %v697_v37 = vmul.f32 0.5, %v696_v35 }
 0xe74   :  { %v693_v38 = vpop.f32.mrf.mxu1 }
 0xe75   :  { %v698_v39 = vsel %vm2180_vm4, %v696_v35, %v697_v37 }
 0xe76   :  { %2029 = vtanh.f32 %v698_v39  ;;  %v1892_v40 = vpop.f32.mrf.mxu1 }
 0xe83   :  { %v2030_v41 = vpop.eup %2029 }
 0xe84   :  { %v700_v42 = vmul.f32 0.5, %v2030_v41 }
 0xe86   :  { %v701_v43 = vadd.f32 0.5, %v700_v42 }
 0xe88   :  { %v702_v44 = vsel %vm2180_vm4, %v2030_v41, %v701_v43 }
 0xe89   :  { %705 = vrot.lane.b32.xlu0 %v702_v44, %s2078_s24  ;;  %v703_v47 = vmul.f32 %v702_v44, %v641_v27  ;;  %v211_v27 = vadd.f32 %v2308_v60, %v2177_v10 }
 0xefb   :  { %v706_v45 = vpop.permute.xlu0 %705 }
 0xefc   :  { %v708_v46 = vmul.f32 %v706_v45, %v702_v44 }
 0xefe   :  { %710 = vrot.lane.b32.xlu1 %v708_v46, %s2079_s25 }
 0xf70   :  { %v711_v48 = vpop.permute.xlu1 %710 }
 0xf71   :  { %v713_v49 = vadd.f32 %v711_v48, %v703_v47  ;;  %v216_v48 = vadd.f32 %v2177_v10, %v2314_v63 }
 0xf73   :  { %2031 = vtanh.f32 %v713_v49 }
 0xf80   :  { %v2032_v50 = vpop.eup %2031 }
 0xf81   :  { %716 = vrot.lane.b32.xlu0 %v2032_v50, %s2078_s24 }
 0xff3   :  { %v717_v51 = vpop.permute.xlu0 %716 }
 0xff4   :  { %v719_v52 = vmul.f32 %v717_v51, %v702_v44 }
 0xff6   :  { %v721_v53 = vpack.c.bf16 %v719_v52, %v719_v52 }
 0xff8   :  { %723 = vrot.lane.b32.xlu1 %v721_v53, %s2079_s25 }
0x106a   :  { %v724_v54 = vpop.permute.xlu1 %723 }
0x106b   :  { %1898 = vmatmul.mubr.msk.bf16.vlgmr.msra.gmra.mxu0 %vm292_vm5, %v724_v54 }
0x106c   :  { %1910 = vmatpush3.bf16.msra.mxu0 %v2148_v3  ;;  %1913 = vmatprep.mubr.msk.bf16.mxu0 %vm2076_vm1, %v2075_v1 }
0x106d   :  { %1911 = vmatprep.subr.bf16.mxu0 %v2075_v1 }
0x1070   :  { %1912 = vmatpush3.bf16.msra.mxu0 %v2158_v5 }
0x1071   :  { %1925 = vmatprep.subr.bf16.mxu0 %v2075_v1 }
0x112b   :  { %v762_v56 = vpop.f32.mrf.mxu0 }
0x112c   :  { %v768_v57 = vadd.f32 %v762_v56, %v206_v55 }
0x112d   :  { %v1899_v58 = vpop.f32.mrf.mxu0 }
0x112e   :  { %v769_v59 = vmul.f32 0.5, %v768_v57 }
0x112f   :  { %v765_v9 = vpop.f32.mrf.mxu0 }
0x1130   :  { %v770_v11 = vsel %vm2180_vm4, %v768_v57, %v769_v59 }
0x1131   :  { %2033 = vtanh.f32 %v770_v11  ;;  %v1900_v12 = vpop.f32.mrf.mxu0 }
0x113e   :  { %v2034_v13 = vpop.eup %2033 }
0x113f   :  { %v772_v14 = vmul.f32 0.5, %v2034_v13 }
0x1141   :  { %v773_v16 = vadd.f32 0.5, %v772_v14 }
0x1143   :  { %v774_v17 = vsel %vm2180_vm4, %v2034_v13, %v773_v16 }
0x1144   :  { %777 = vrot.lane.b32.xlu0 %v774_v17, %s2078_s24  ;;  %v775_v19 = vmul.f32 %v774_v17, %v713_v49 }
0x11b6   :  { %v778_v18 = vpop.permute.xlu0 %777 }
0x11b7   :  { %v780_v61 = vmul.f32 %v778_v18, %v774_v17 }
0x11b9   :  { %782 = vrot.lane.b32.xlu1 %v780_v61, %s2079_s25 }
0x122b   :  { %v783_v20 = vpop.permute.xlu1 %782 }
0x122c   :  { %v785_v21 = vadd.f32 %v783_v20, %v775_v19  ;;  %v221_v19 = vadd.f32 %v2312_v62, %v2177_v10 }
0x122e   :  { %2035 = vtanh.f32 %v785_v21 }
0x123b   :  { %v2036_v22 = vpop.eup %2035 }
0x123c   :  { %788 = vrot.lane.b32.xlu0 %v2036_v22, %s2078_s24 }
0x12ae   :  { %v789_v23 = vpop.permute.xlu0 %788 }
0x12af   :  { %v791_v24 = vmul.f32 %v789_v23, %v774_v17 }
0x12b1   :  { %v793_v25 = vpack.c.bf16 %v791_v24, %v791_v24 }
0x12b3   :  { %795 = vrot.lane.b32.xlu1 %v793_v25, %s2079_s25 }
0x1325   :  { %v796_v26 = vpop.permute.xlu1 %795 }
0x1326   :  { %1906 = vmatmul.mubr.msk.bf16.vlgmr.msra.gmra.mxu1 %vm292_vm5, %v796_v26 }
0x1327   :  { %1918 = vmatpush3.bf16.msra.mxu1 %v2148_v3  ;;  %1921 = vmatprep.mubr.msk.bf16.mxu1 %vm2076_vm1, %v2075_v1 }
0x1328   :  { %1919 = vmatprep.subr.bf16.mxu1 %v2075_v1 }
0x132b   :  { %1920 = vmatpush3.bf16.msra.mxu1 %v2158_v5 }
0x132c   :  { %1933 = vmatprep.subr.bf16.mxu1 %v2075_v1 }
0x13e6   :  { %v834_v28 = vpop.f32.mrf.mxu1 }
0x13e7   :  { %v840_v29 = vadd.f32 %v834_v28, %v211_v27 }
0x13e8   :  { %v1907_v30 = vpop.f32.mrf.mxu1 }
0x13e9   :  { %v841_v31 = vmul.f32 0.5, %v840_v29 }
0x13ea   :  { %v837_v32 = vpop.f32.mrf.mxu1 }
0x13eb   :  { %v842_v33 = vsel %vm2180_vm4, %v840_v29, %v841_v31 }
0x13ec   :  { %2037 = vtanh.f32 %v842_v33  ;;  %v1908_v34 = vpop.f32.mrf.mxu1 }
0x13f9   :  { %v2038_v35 = vpop.eup %2037 }
0x13fa   :  { %v844_v36 = vmul.f32 0.5, %v2038_v35 }
0x13fc   :  { %v845_v37 = vadd.f32 0.5, %v844_v36 }
0x13fe   :  { %v846_v38 = vsel %vm2180_vm4, %v2038_v35, %v845_v37 }
0x13ff   :  { %849 = vrot.lane.b32.xlu0 %v846_v38, %s2078_s24  ;;  %v847_v40 = vmul.f32 %v846_v38, %v785_v21 }
0x1471   :  { %v850_v39 = vpop.permute.xlu0 %849 }
0x1472   :  { %v852_v60 = vmul.f32 %v850_v39, %v846_v38 }
0x1474   :  { %854 = vrot.lane.b32.xlu1 %v852_v60, %s2079_s25  ;;  %v226_v60 = vadd.f32 %v2177_v10, %v2318_v2 }
0x14e6   :  { %v855_v41 = vpop.permute.xlu1 %854 }
0x14e7   :  { %v857_v42 = vadd.f32 %v855_v41, %v847_v40 }
0x14e9   :  { %2039 = vtanh.f32 %v857_v42 }
0x14f6   :  { %v2040_v43 = vpop.eup %2039 }
0x14f7   :  { %860 = vrot.lane.b32.xlu0 %v2040_v43, %s2078_s24 }
0x1569   :  { %v861_v44 = vpop.permute.xlu0 %860 }
0x156a   :  { %v863_v45 = vmul.f32 %v861_v44, %v846_v38 }
0x156c   :  { %v865_v46 = vpack.c.bf16 %v863_v45, %v863_v45 }
0x156e   :  { %867 = vrot.lane.b32.xlu1 %v865_v46, %s2079_s25 }
0x15e0   :  { %v868_v47 = vpop.permute.xlu1 %867 }
0x15e1   :  { %1914 = vmatmul.mubr.msk.bf16.vlgmr.msra.gmra.mxu0 %vm292_vm5, %v868_v47 }
0x15e2   :  { %1926 = vmatpush3.bf16.msra.mxu0 %v2148_v3  ;;  %1929 = vmatprep.mubr.msk.bf16.mxu0 %vm2076_vm1, %v2075_v1 }
0x15e3   :  { %1927 = vmatprep.subr.bf16.mxu0 %v2075_v1 }
0x15e6   :  { %1928 = vmatpush3.bf16.msra.mxu0 %v2158_v5 }
0x15e7   :  { %1941 = vmatprep.subr.bf16.mxu0 %v2075_v1 }
0x16a1   :  { %v906_v49 = vpop.f32.mrf.mxu0 }
0x16a2   :  { %v912_v50 = vadd.f32 %v906_v49, %v216_v48 }
0x16a3   :  { %v1915_v51 = vpop.f32.mrf.mxu0 }
0x16a4   :  { %v913_v52 = vmul.f32 0.5, %v912_v50 }
0x16a5   :  { %v909_v53 = vpop.f32.mrf.mxu0 }
0x16a6   :  { %v914_v54 = vsel %vm2180_vm4, %v912_v50, %v913_v52 }
0x16a7   :  { %2041 = vtanh.f32 %v914_v54  ;;  %v1916_v55 = vpop.f32.mrf.mxu0 }
0x16b4   :  { %v2042_v56 = vpop.eup %2041 }
0x16b5   :  { %v916_v57 = vmul.f32 0.5, %v2042_v56 }
0x16b7   :  { %v917_v58 = vadd.f32 0.5, %v916_v57 }
0x16b9   :  { %v918_v59 = vsel %vm2180_vm4, %v2042_v56, %v917_v58 }
0x16ba   :  { %921 = vrot.lane.b32.xlu0 %v918_v59, %s2078_s24  ;;  %v919_v11 = vmul.f32 %v918_v59, %v857_v42 }
0x172c   :  { %v922_v9 = vpop.permute.xlu0 %921 }
0x172d   :  { %v924_v63 = vmul.f32 %v922_v9, %v918_v59  ;;  %v231_v9 = vadd.f32 %v2316_v0, %v2177_v10 }
0x172f   :  { %926 = vrot.lane.b32.xlu1 %v924_v63, %s2079_s25 }
0x17a1   :  { %v927_v12 = vpop.permute.xlu1 %926 }
0x17a2   :  { %v929_v13 = vadd.f32 %v927_v12, %v919_v11 }
0x17a4   :  { %2043 = vtanh.f32 %v929_v13 }
0x17b1   :  { %v2044_v14 = vpop.eup %2043 }
0x17b2   :  { %932 = vrot.lane.b32.xlu0 %v2044_v14, %s2078_s24 }
0x1824   :  { %v933_v16 = vpop.permute.xlu0 %932 }
0x1825   :  { %v935_v17 = vmul.f32 %v933_v16, %v918_v59 }
0x1827   :  { %v937_v18 = vpack.c.bf16 %v935_v17, %v935_v17 }
0x1829   :  { %939 = vrot.lane.b32.xlu1 %v937_v18, %s2079_s25 }
0x189b   :  { %v940_v61 = vpop.permute.xlu1 %939 }
0x189c   :  { %1922 = vmatmul.mubr.msk.bf16.vlgmr.msra.gmra.mxu1 %vm292_vm5, %v940_v61 }
0x189d   :  { %1934 = vmatpush3.bf16.msra.mxu1 %v2148_v3  ;;  %1937 = vmatprep.mubr.msk.bf16.mxu1 %vm2076_vm1, %v2075_v1 }
0x189e   :  { %1935 = vmatprep.subr.bf16.mxu1 %v2075_v1 }
0x18a1   :  { %1936 = vmatpush3.bf16.msra.mxu1 %v2158_v5 }
0x18a2   :  { %1949 = vmatprep.subr.bf16.mxu1 %v2075_v1 }
0x195c   :  { %v978_v20 = vpop.f32.mrf.mxu1 }
0x195d   :  { %v984_v21 = vadd.f32 %v978_v20, %v221_v19 }
0x195e   :  { %v1923_v22 = vpop.f32.mrf.mxu1 }
0x195f   :  { %v985_v23 = vmul.f32 0.5, %v984_v21 }
0x1960   :  { %v981_v24 = vpop.f32.mrf.mxu1 }
0x1961   :  { %v986_v25 = vsel %vm2180_vm4, %v984_v21, %v985_v23 }
0x1962   :  { %2045 = vtanh.f32 %v986_v25  ;;  %v1924_v26 = vpop.f32.mrf.mxu1 }
0x196f   :  { %v2046_v27 = vpop.eup %2045 }
0x1970   :  { %v988_v28 = vmul.f32 0.5, %v2046_v27 }
0x1972   :  { %v989_v29 = vadd.f32 0.5, %v988_v28 }
0x1974   :  { %v990_v30 = vsel %vm2180_vm4, %v2046_v27, %v989_v29 }
0x1975   :  { %993 = vrot.lane.b32.xlu0 %v990_v30, %s2078_s24  ;;  %v991_v32 = vmul.f32 %v990_v30, %v929_v13 }
0x19e7   :  { %v994_v31 = vpop.permute.xlu0 %993 }
0x19e8   :  { %v996_v62 = vmul.f32 %v994_v31, %v990_v30 }
0x19ea   :  { %998 = vrot.lane.b32.xlu1 %v996_v62, %s2079_s25 }
0x1a5c   :  { %v999_v33 = vpop.permute.xlu1 %998 }
0x1a5d   :  { %v1001_v34 = vadd.f32 %v999_v33, %v991_v32 }
0x1a5f   :  { %2047 = vtanh.f32 %v1001_v34 }
0x1a6c   :  { %v2048_v35 = vpop.eup %2047 }
0x1a6d   :  { %1004 = vrot.lane.b32.xlu0 %v2048_v35, %s2078_s24 }
0x1adf   :  { %v1005_v36 = vpop.permute.xlu0 %1004 }
0x1ae0   :  { %v1007_v37 = vmul.f32 %v1005_v36, %v990_v30  ;;  %v236_v30 = vadd.f32 %v2177_v10, %v2322_v6 }
0x1ae2   :  { %v1009_v38 = vpack.c.bf16 %v1007_v37, %v1007_v37 }
0x1ae4   :  { %1011 = vrot.lane.b32.xlu1 %v1009_v38, %s2079_s25 }
0x1b56   :  { %v1012_v39 = vpop.permute.xlu1 %1011 }
0x1b57   :  { %1930 = vmatmul.mubr.msk.bf16.vlgmr.msra.gmra.mxu0 %vm292_vm5, %v1012_v39 }
0x1b58   :  { %1942 = vmatpush3.bf16.msra.mxu0 %v2148_v3  ;;  %1945 = vmatprep.mubr.msk.bf16.mxu0 %vm2076_vm1, %v2075_v1 }
0x1b59   :  { %1943 = vmatprep.subr.bf16.mxu0 %v2075_v1 }
0x1b5c   :  { %1944 = vmatpush3.bf16.msra.mxu0 %v2158_v5 }
0x1b5d   :  { %1957 = vmatprep.subr.bf16.mxu0 %v2075_v1 }
0x1c17   :  { %v1050_v40 = vpop.f32.mrf.mxu0 }
0x1c18   :  { %v1056_v41 = vadd.f32 %v1050_v40, %v226_v60 }
0x1c19   :  { %v1931_v42 = vpop.f32.mrf.mxu0 }
0x1c1a   :  { %v1057_v43 = vmul.f32 0.5, %v1056_v41 }
0x1c1b   :  { %v1053_v44 = vpop.f32.mrf.mxu0 }
0x1c1c   :  { %v1058_v45 = vsel %vm2180_vm4, %v1056_v41, %v1057_v43 }
0x1c1d   :  { %2049 = vtanh.f32 %v1058_v45  ;;  %v1932_v46 = vpop.f32.mrf.mxu0 }
0x1c2a   :  { %v2050_v47 = vpop.eup %2049 }
0x1c2b   :  { %v1060_v48 = vmul.f32 0.5, %v2050_v47 }
0x1c2d   :  { %v1061_v49 = vadd.f32 0.5, %v1060_v48  ;;  %v2073_v48 = vld [vmem:[%s2575_s2 + $0x8] sm:$0xff]  }
0x1c2f   :  { %v1062_v50 = vsel %vm2180_vm4, %v2050_v47, %v1061_v49  ;;  %v241_v49 = vadd.f32 %v2320_v4, %v2177_v10 }
0x1c30   :  { %1065 = vrot.lane.b32.xlu0 %v1062_v50, %s2078_s24  ;;  %v1063_v52 = vmul.f32 %v1062_v50, %v1001_v34 }
0x1ca2   :  { %v1066_v51 = vpop.permute.xlu0 %1065 }
0x1ca3   :  { %v1068_v2 = vmul.f32 %v1066_v51, %v1062_v50 }
0x1ca5   :  { %1070 = vrot.lane.b32.xlu1 %v1068_v2, %s2079_s25 }
0x1d17   :  { %v1071_v53 = vpop.permute.xlu1 %1070 }
0x1d18   :  { %v1073_v54 = vadd.f32 %v1071_v53, %v1063_v52 }
0x1d1a   :  { %2051 = vtanh.f32 %v1073_v54 }
0x1d27   :  { %v2052_v55 = vpop.eup %2051 }
0x1d28   :  { %1076 = vrot.lane.b32.xlu0 %v2052_v55, %s2078_s24 }
0x1d9a   :  { %v1077_v56 = vpop.permute.xlu0 %1076 }
0x1d9b   :  { %v1079_v57 = vmul.f32 %v1077_v56, %v1062_v50 }
0x1d9d   :  { %v1081_v58 = vpack.c.bf16 %v1079_v57, %v1079_v57 }
0x1d9f   :  { %1083 = vrot.lane.b32.xlu1 %v1081_v58, %s2079_s25 }
0x1e11   :  { %v1084_v59 = vpop.permute.xlu1 %1083 }
0x1e12   :  { %1938 = vmatmul.mubr.msk.bf16.vlgmr.msra.gmra.mxu1 %vm292_vm5, %v1084_v59 }
0x1e13   :  { %1950 = vmatpush3.bf16.msra.mxu1 %v2148_v3  ;;  %1953 = vmatprep.mubr.msk.bf16.mxu1 %vm2076_vm1, %v2075_v1 }
0x1e14   :  { %1951 = vmatprep.subr.bf16.mxu1 %v2075_v1 }
0x1e17   :  { %1952 = vmatpush3.bf16.msra.mxu1 %v2158_v5 }
0x1e18   :  { %1965 = vmatprep.subr.bf16.mxu1 %v2075_v1 }
0x1ed2   :  { %v1122_v63 = vpop.f32.mrf.mxu1 }
0x1ed3   :  { %v1128_v11 = vadd.f32 %v1122_v63, %v231_v9 }
0x1ed4   :  { %v1939_v12 = vpop.f32.mrf.mxu1 }
0x1ed5   :  { %v1129_v13 = vmul.f32 0.5, %v1128_v11 }
0x1ed6   :  { %v1125_v14 = vpop.f32.mrf.mxu1 }
0x1ed7   :  { %v1130_v16 = vsel %vm2180_vm4, %v1128_v11, %v1129_v13 }
0x1ed8   :  { %2053 = vtanh.f32 %v1130_v16  ;;  %v1940_v17 = vpop.f32.mrf.mxu1 }
0x1ed9   :  { %v2074_v17 = vld [vmem:[%s2576_s3] ss:$0 sm:$0xff] }
0x1ee5   :  { %v2054_v18 = vpop.eup %2053 }
0x1ee6   :  { %v1132_v61 = vmul.f32 0.5, %v2054_v18 }
0x1ee8   :  { %v1133_v19 = vadd.f32 0.5, %v1132_v61 }
0x1eea   :  { %v1134_v20 = vsel %vm2180_vm4, %v2054_v18, %v1133_v19  ;;  %v246_v18 = vadd.f32 %v2074_v17, %v2326_v8 }
0x1eeb   :  { %1137 = vrot.lane.b32.xlu0 %v1134_v20, %s2078_s24  ;;  %v1135_v22 = vmul.f32 %v1134_v20, %v1073_v54 }
0x1f5d   :  { %v1138_v21 = vpop.permute.xlu0 %1137 }
0x1f5e   :  { %v1140_v0 = vmul.f32 %v1138_v21, %v1134_v20 }
0x1f60   :  { %1142 = vrot.lane.b32.xlu1 %v1140_v0, %s2079_s25 }
0x1fd2   :  { %v1143_v23 = vpop.permute.xlu1 %1142 }
0x1fd3   :  { %v1145_v24 = vadd.f32 %v1143_v23, %v1135_v22 }
0x1fd5   :  { %2055 = vtanh.f32 %v1145_v24 }
0x1fe2   :  { %v2056_v25 = vpop.eup %2055 }
0x1fe3   :  { %1148 = vrot.lane.b32.xlu0 %v2056_v25, %s2078_s24 }
0x2055   :  { %v1149_v26 = vpop.permute.xlu0 %1148 }
0x2056   :  { %v1151_v27 = vmul.f32 %v1149_v26, %v1134_v20 }
0x2058   :  { %v1153_v28 = vpack.c.bf16 %v1151_v27, %v1151_v27 }
0x205a   :  { %1155 = vrot.lane.b32.xlu1 %v1153_v28, %s2079_s25 }
0x20cc   :  { %v1156_v29 = vpop.permute.xlu1 %1155 }
0x20cd   :  { %1946 = vmatmul.mubr.msk.bf16.vlgmr.msra.gmra.mxu0 %vm292_vm5, %v1156_v29 }
0x20ce   :  { %1958 = vmatpush3.bf16.msra.mxu0 %v2148_v3  ;;  %1961 = vmatprep.mubr.msk.bf16.mxu0 %vm2076_vm1, %v2075_v1 }
0x20cf   :  { %1959 = vmatprep.subr.bf16.mxu0 %v2075_v1 }
0x20d2   :  { %1960 = vmatpush3.bf16.msra.mxu0 %v2158_v5 }
0x20d3   :  { %1973 = vmatprep.subr.mxu0 %v2075_v1 }
0x218d   :  { %v1194_v31 = vpop.f32.mrf.mxu0 }
0x218e   :  { %v1200_v62 = vadd.f32 %v1194_v31, %v236_v30 }
0x218f   :  { %v1947_v32 = vpop.f32.mrf.mxu0 }
0x2190   :  { %v1201_v33 = vmul.f32 0.5, %v1200_v62 }
0x2191   :  { %v1197_v34 = vpop.f32.mrf.mxu0 }
0x2192   :  { %v1202_v3 = vsel %vm2180_vm4, %v1200_v62, %v1201_v33 }
0x2193   :  { %2057 = vtanh.f32 %v1202_v3  ;;  %v1948_v35 = vpop.f32.mrf.mxu0 }
0x2194   :  { %v251_v35 = vadd.f32 %v2074_v17, %v2324_v7 }
0x21a0   :  { %v2058_v36 = vpop.eup %2057 }
0x21a1   :  { %v1204_v37 = vmul.f32 0.5, %v2058_v36 }
0x21a3   :  { %v1205_v38 = vadd.f32 0.5, %v1204_v37 }
0x21a5   :  { %v1206_v39 = vsel %vm2180_vm4, %v2058_v36, %v1205_v38 }
0x21a6   :  { %1209 = vrot.lane.b32.xlu0 %v1206_v39, %s2078_s24  ;;  %v1207_v40 = vmul.f32 %v1206_v39, %v1145_v24 }
0x2218   :  { %v1210_v60 = vpop.permute.xlu0 %1209 }
0x2219   :  { %v1212_v6 = vmul.f32 %v1210_v60, %v1206_v39 }
0x221b   :  { %1214 = vrot.lane.b32.xlu1 %v1212_v6, %s2079_s25 }
0x228d   :  { %v1215_v41 = vpop.permute.xlu1 %1214 }
0x228e   :  { %v1217_v42 = vadd.f32 %v1215_v41, %v1207_v40 }
0x2290   :  { %2059 = vtanh.f32 %v1217_v42 }
0x229d   :  { %v2060_v43 = vpop.eup %2059 }
0x229e   :  { %1220 = vrot.lane.b32.xlu0 %v2060_v43, %s2078_s24 }
0x2310   :  { %v1221_v44 = vpop.permute.xlu0 %1220 }
0x2311   :  { %v1223_v45 = vmul.f32 %v1221_v44, %v1206_v39 }
0x2313   :  { %v1225_v46 = vpack.c.bf16 %v1223_v45, %v1223_v45 }
0x2315   :  { %1227 = vrot.lane.b32.xlu1 %v1225_v46, %s2079_s25 }
0x2387   :  { %v1228_v47 = vpop.permute.xlu1 %1227 }
0x2388   :  { %1954 = vmatmul.mubr.msk.bf16.vlgmr.msra.gmra.mxu1 %vm292_vm5, %v1228_v47 }
0x2389   :  { %1966 = vmatpush3.bf16.msra.mxu1 %v2073_v48  ;;  %1969 = vmatprep.mubr.msk.bf16.mxu1 %vm2076_vm1, %v2075_v1 }
0x238a   :  { %1967 = vmatprep.subr.bf16.mxu1 %v2075_v1 }
0x238d   :  { %1968 = vmatpush3.bf16.msra.mxu1 %v2158_v5 }
0x238e   :  { %1984 = vmatprep.subr.mxu1 %v2075_v1 }
0x2448   :  { %v1266_v50 = vpop.f32.mrf.mxu1 }
0x2449   :  { %v1272_v51 = vadd.f32 %v1266_v50, %v241_v49  ;;  %v1443_v49 = vld [vmem:[%s2577_s4 + $0x18] sm:$0xff]  ;;  %v1442_v50 = vld [vmem:[%s2577_s4 + $0x10] sm:$0xff] }
0x244a   :  { %v1955_v2 = vpop.f32.mrf.mxu1 }
0x244b   :  { %v1273_v52 = vmul.f32 0.5, %v1272_v51 }
0x244c   :  { %v1269_v53 = vpop.f32.mrf.mxu1 }
0x244d   :  { %v1274_v54 = vsel %vm2180_vm4, %v1272_v51, %v1273_v52  ;;  %v1440_v51 = vld [vmem:[%s2577_s4] sm:$0xff]  ;;  %v1530_v52 = vld [vmem:[%s2578_s6 + $0x18] sm:$0xff]  ;;  %v1529_v53 = vld [vmem:[%s2578_s6 + $0x10] sm:$0xff] }
0x244e   :  { %2061 = vtanh.f32 %v1274_v54  ;;  %v1956_v55 = vpop.f32.mrf.mxu1 }
0x245b   :  { %v2062_v56 = vpop.eup %2061 }
0x245c   :  { %v1276_v57 = vmul.f32 0.5, %v2062_v56 }
0x245e   :  { %v1277_v58 = vadd.f32 0.5, %v1276_v57  ;;  %v1528_v57 = vld [vmem:[%s2578_s6 + $0x8] sm:$0xff] }
0x2460   :  { %v1278_v5 = vsel %vm2180_vm4, %v2062_v56, %v1277_v58  ;;  %v1527_v58 = vld [vmem:[%s2578_s6] sm:$0xff] }
0x2461   :  { %1281 = vrot.lane.b32.xlu0 %v1278_v5, %s2078_s24  ;;  %v1279_v4 = vmul.f32 %v1278_v5, %v1217_v42 }
0x24d3   :  { %v1282_v59 = vpop.permute.xlu0 %1281 }
0x24d4   :  { %v1284_v10 = vmul.f32 %v1282_v59, %v1278_v5 }
0x24d6   :  { %1286 = vrot.lane.b32.xlu1 %v1284_v10, %s2079_s25 }
0x2548   :  { %v1287_v9 = vpop.permute.xlu1 %1286 }
0x2549   :  { %v1289_v63 = vadd.f32 %v1287_v9, %v1279_v4 }
0x254b   :  { %2063 = vtanh.f32 %v1289_v63 }
0x2558   :  { %v2064_v11 = vpop.eup %2063 }
0x2559   :  { %1292 = vrot.lane.b32.xlu0 %v2064_v11, %s2078_s24  ;;  %v1612_v11 = vld [vmem:[%s2580_s8] sm:$0xff] }
0x25cb   :  { %v1293_v12 = vpop.permute.xlu0 %1292 }
0x25cc   :  { %v1295_v13 = vmul.f32 %v1293_v12, %v1278_v5  ;;  %v1735_v5 = vld [vmem:[%s2579_s5] ss:$0 sm:$0xff] }
0x25cd   :  { %v1737_v12 = vld [vmem:[%s2581_s7] ss:$0 sm:$0xff] }
0x25ce   :  { %v1297_v14 = vpack.c.bf16 %v1295_v13, %v1295_v13 }
0x25d0   :  { %1299 = vrot.lane.b32.xlu1 %v1297_v14, %s2079_s25 }
0x2642   :  { %v1300_v16 = vpop.permute.xlu1 %1299 }
0x2643   :  { %1962 = vmatmul.mubr.msk.bf16.vlgmr.msra.gmra.mxu0 %vm292_vm5, %v1300_v16 }
0x2644   :  { %1981 = vmatprep.mubr.msk.f32.mxu0 %vm2076_vm1, %v2075_v1  ;;  %1974 = vmatpush3.msra.mxu0 %v1443_v49 }
0x2645   :  { %1975 = vmatprep.subr.mxu0 %v2075_v1 }
0x2646   :  { %1976 = vmatpush3.msra.mxu0 %v1442_v50 }
0x2647   :  { %1977 = vmatprep.subr.mxu0 %v2075_v1 }
0x2648   :  { %1978 = vmatpush3.msra.mxu0 %v1441_v15 }
0x2649   :  { %1979 = vmatprep.subr.mxu0 %v2075_v1 }
0x264a   :  { %1980 = vmatpush3.msra.mxu0 %v1440_v51 }
0x264b   :  { %1995 = vmatprep.subr.mxu0 %v2075_v1 }
0x2703   :  { %v1338_v61 = vpop.f32.mrf.mxu0 }
0x2704   :  { %v1344_v19 = vadd.f32 %v1338_v61, %v246_v18  ;;  %v1739_v18 = vld [vmem:[%s2582_s9] ss:$0 sm:$0xff] }
0x2705   :  { %v1963_v20 = vpop.f32.mrf.mxu0 }
0x2706   :  { %v1345_v21 = vmul.f32 0.5, %v1344_v19 }
0x2707   :  { %v1341_v0 = vpop.f32.mrf.mxu0 }
0x2708   :  { %v1346_v22 = vsel %vm2180_vm4, %v1344_v19, %v1345_v21 }
0x2709   :  { %2065 = vtanh.f32 %v1346_v22  ;;  %v1964_v23 = vpop.f32.mrf.mxu0 }
0x2716   :  { %v2066_v24 = vpop.eup %2065 }
0x2717   :  { %v1348_v25 = vmul.f32 0.5, %v2066_v24 }
0x2719   :  { %v1349_v26 = vadd.f32 0.5, %v1348_v25 }
0x271b   :  { %v1350_v27 = vsel %vm2180_vm4, %v2066_v24, %v1349_v26 }
0x271c   :  { %1353 = vrot.lane.b32.xlu0 %v1350_v27, %s2078_s24  ;;  %v1351_v29 = vmul.f32 %v1350_v27, %v1289_v63  ;;  %v1613_v63 = vld [vmem:[%s2580_s8 + $0x8] sm:$0xff] }
0x278e   :  { %v1354_v28 = vpop.permute.xlu0 %1353 }
0x278f   :  { %v1356_v8 = vmul.f32 %v1354_v28, %v1350_v27 }
0x2791   :  { %1358 = vrot.lane.b32.xlu1 %v1356_v8, %s2079_s25 }
0x2803   :  { %v1359_v30 = vpop.permute.xlu1 %1358 }
0x2804   :  { %v1361_v31 = vadd.f32 %v1359_v30, %v1351_v29 }
0x2806   :  { %2067 = vtanh.f32 %v1361_v31 }
0x2813   :  { %v2068_v62 = vpop.eup %2067 }
0x2814   :  { %1364 = vrot.lane.b32.xlu0 %v2068_v62, %s2078_s24 }
0x2886   :  { %v1365_v32 = vpop.permute.xlu0 %1364 }
0x2887   :  { %v1367_v33 = vmul.f32 %v1365_v32, %v1350_v27 }
0x2889   :  { %v1369_v34 = vpack.c.bf16 %v1367_v33, %v1367_v33 }
0x288b   :  { %1371 = vrot.lane.b32.xlu1 %v1369_v34, %s2079_s25 }
0x28fd   :  { %v1372_v3 = vpop.permute.xlu1 %1371 }
0x28fe   :  { %1970 = vmatmul.mubr.msk.bf16.vlgmr.msra.gmra.mxu1 %vm292_vm5, %v1372_v3 }
0x28ff   :  { %1992 = vmatprep.mubr.msk.f32.mxu1 %vm2076_vm1, %v2075_v1  ;;  %1985 = vmatpush3.msra.mxu1 %v1530_v52 }
0x2900   :  { %1986 = vmatprep.subr.mxu1 %v2075_v1 }
0x2901   :  { %1987 = vmatpush3.msra.mxu1 %v1529_v53 }
0x2902   :  { %1988 = vmatprep.subr.mxu1 %v2075_v1 }
0x2903   :  { %1989 = vmatpush3.msra.mxu1 %v1528_v57 }
0x2904   :  { %1990 = vmatprep.subr.mxu1 %v2075_v1 }
0x2905   :  { %1991 = vmatpush3.msra.mxu1 %v1527_v58 }
0x29be   :  { %v1410_v36 = vpop.f32.mrf.mxu1 }
0x29bf   :  { %v1416_v37 = vadd.f32 %v1410_v36, %v251_v35 }
0x29c0   :  { %v1971_v38 = vpop.f32.mrf.mxu1 }
0x29c1   :  { %v1417_v39 = vmul.f32 0.5, %v1416_v37 }
0x29c2   :  { %v1413_v60 = vpop.f32.mrf.mxu1 }
0x29c3   :  { %v1418_v6 = vsel %vm2180_vm4, %v1416_v37, %v1417_v39 }
0x29c4   :  { %2069 = vtanh.f32 %v1418_v6  ;;  %v1972_v40 = vpop.f32.mrf.mxu1 }
0x29d1   :  { %v2070_v41 = vpop.eup %2069 }
0x29d2   :  { %v1420_v42 = vmul.f32 0.5, %v2070_v41 }
0x29d4   :  { %v1421_v43 = vadd.f32 0.5, %v1420_v42 }
0x29d6   :  { %v1422_v44 = vsel %vm2180_vm4, %v2070_v41, %v1421_v43 }
0x29d7   :  { %1425 = vrot.lane.b32.xlu0 %v1422_v44, %s2078_s24  ;;  %v1423_v46 = vmul.f32 %v1422_v44, %v1361_v31 }
0x2a49   :  { %v1426_v45 = vpop.permute.xlu0 %1425 }
0x2a4a   :  { %v1428_v7 = vmul.f32 %v1426_v45, %v1422_v44 }
0x2a4c   :  { %1430 = vrot.lane.b32.xlu1 %v1428_v7, %s2079_s25 }
0x2abe   :  { %v1431_v47 = vpop.permute.xlu1 %1430 }
0x2abf   :  { %v1433_v48 = vadd.f32 %v1431_v47, %v1423_v46 }
0x2ac1   :  { %2071 = vtanh.f32 %v1433_v48 }
0x2ace   :  { %v2072_v2 = vpop.eup %2071 }
0x2acf   :  { %1436 = vrot.lane.b32.xlu0 %v2072_v2, %s2078_s24 }
0x2b41   :  { %v1437_v54 = vpop.permute.xlu0 %1436 }
0x2b42   :  { %v1439_v55 = vmul.f32 %v1437_v54, %v1422_v44 }
0x2b44   :  { %1452 = vrot.lane.b32.xlu1 %v1439_v55, %s2079_s25 }
0x2bb6   :  { %v1453_v56 = vpop.permute.xlu1 %1452 }
0x2bb7   :  { %1982 = vmatmul.mubr.msk.f32.vlgmr.msra.gmra.mxu0 %vm292_vm5, %v1453_v56 }
0x2bb8   :  { %1999 = vmatprep.mubr.msk.f32.mxu0 %vm2076_vm1, %v2075_v1  ;;  %1996 = vmatpush3.msra.mxu0 %v1613_v63 }
0x2bb9   :  { %1997 = vmatprep.subr.mxu0 %v2075_v1 }
0x2bba   :  { %1998 = vmatpush3.msra.mxu0 %v1612_v11 }
0x2c77   :  { %v1522_v59 = vpop.f32.mrf.mxu0 }
0x2c78   :  { %v1523_v10 = vadd.f32 %v1735_v5, %v1522_v59 }
0x2c79   :  { %v1983_v4 = vpop.f32.mrf.mxu0 }
0x2c7a   :  { %v1526_v9 = vmax.f32 %v1523_v10, 0.0 }
0x2c7c   :  { %1993 = vmatmul.mubr.msk.f32.vlgmr.msra.gmra.mxu1 %vm292_vm5, %v1526_v9 }
0x2d3c   :  { %v1607_v13 = vpop.f32.mrf.mxu1 }
0x2d3d   :  { %v1608_v14 = vadd.f32 %v1737_v12, %v1607_v13 }
0x2d3e   :  { %v1994_v16 = vpop.f32.mrf.mxu1 }
0x2d3f   :  { %v1611_v17 = vmax.f32 %v1608_v14, 0.0 }
0x2d41   :  { %2000 = vmatmul.mubr.msk.f32.vlgmr.msra.gmra.mxu0 %vm1621_vm6, %v1611_v17 }
0x2e01   :  { %v1691_v1 = vpop.f32.mrf.mxu0 }
0x2e02   :  { %v1692_v61 = vadd.f32 %v1739_v18, %v1691_v1 }
0x2e03   :  { %v2001_v19 = vpop.f32.mrf.mxu0 }
0x2e04   :  { %1696 = vst.msk [vmem:[%s2583_s10] sm:$0xff] %vm1695_vm7, %v1692_v61 }

</bundles_post_ra>
